<compile_context>
chip_gen: v7x
topology: tpu7x:2x2x1
jax: 0.10.0
libtpu: 0.0.40
codegen_flags: <defaults>
</compile_context>

<pallas_src>
import functools
import math

import jax
import jax.numpy as jnp
from jax import lax
from jax.experimental import pallas as pl
from jax.experimental.pallas import tpu as pltpu

NEG_SLOPE = 0.01        # nn.LeakyReLU() default negative_slope
TM_SUB = 256            # MXU sub-tile rows (f32 acc = 32 vregs at TN=128)
TN = 128                # output-channel tile inside the kernel (lane-dense stores)
TM_WIN_MAX = 1024       # flattened output rows per grid step (pipelined window)


def _round_up(x, m):
    return ((x + m - 1) // m) * m


# ---------------------------------------------------------------------------
# Kernel: one (batch, window) grid step of conv3x3/s2/p1 + bias + LeakyReLU.
#   ph_ref : (2, L, C2)           bf16  row-parity phase window (auto-pipelined)
#   w_ref  : (3, 2, C2, Cout_pad) bf16  resident weights [kh, (kw01|kw2), k, cout]
#   b_ref  : (1, Cout_pad)        f32   resident bias
#   o_ref  : (TM_WIN, Cout_pad)         output window
# For output flat index m (over the (i, j') grid, j' in [0, Wo]):
#   tap (kh, kw=0,1) = phase[kh&1] row m + (kh//2)*(Wo+1), channels [0:2C]
#   tap (kh, kw=2)   = phase[kh&1] row m + (kh//2)*(Wo+1) + 1, channels [0:C]
# ---------------------------------------------------------------------------
def _conv3x3s2_kernel(Wo1, ph_ref, w_ref, b_ref, o_ref):
    tm_win, cout_pad = o_ref.shape
    n_sub = tm_win // TM_SUB
    n_ct = cout_pad // TN
    for s in range(n_sub):                       # static unroll (<= 4)
        m0 = s * TM_SUB
        for n in range(n_ct):                    # static unroll
            c0 = n * TN
            acc = jnp.zeros((TM_SUB, TN), jnp.float32)
            for kh in range(3):                  # 6 dots, K = C2 each
                par = kh & 1
                d = m0 + (kh // 2) * Wo1
                lhs_a = ph_ref[par, d:d + TM_SUB, :]           # taps (kh, kw=0,1)
                lhs_b = ph_ref[par, d + 1:d + 1 + TM_SUB, :]   # tap  (kh, kw=2)
                acc = acc + jnp.dot(lhs_a, w_ref[kh, 0, :, c0:c0 + TN],
                                    preferred_element_type=jnp.float32)
                acc = acc + jnp.dot(lhs_b, w_ref[kh, 1, :, c0:c0 + TN],
                                    preferred_element_type=jnp.float32)
            acc = acc + b_ref[:, c0:c0 + TN]
            o_ref[m0:m0 + TM_SUB, c0:c0 + TN] = jnp.where(
                acc >= 0, acc, NEG_SLOPE * acc).astype(o_ref.dtype)


# ---------------------------------------------------------------------------
# One DownSampleConvBlock: Conv2d(Cin, Cout, k=3, s=2, p=1) + LeakyReLU (NHWC)
# ---------------------------------------------------------------------------
def downsample_conv_block(x_nhwc, w_oihw, bias, *, out_dtype):
    B, H, W, C = x_nhwc.shape
    Cout = w_oihw.shape[0]
    Ho, Wo = H // 2, W // 2
    Wo1 = Wo + 1
    C2 = 2 * C
    Cout_pad = _round_up(Cout, TN)

    M_valid = Ho * Wo1                           # (i, j') grid; j' == Wo column is discarded
    tm_win = min(TM_WIN_MAX, _round_up(M_valid, TM_SUB))
    M_pad = _round_up(M_valid, tm_win)
    Mt = M_pad // tm_win
    L = tm_win + Wo1 + 1                         # window rows incl. halo for (kh=2, kw=2)
    R = M_pad + Wo1 + 1                          # phase rows that can ever be read
    half_rows = -(-R // Wo1)                     # rows per parity (in units of Wo1 cols)
    Hp = 2 * half_rows                           # padded input height (>= H + 2)

    # Prologue (fused XLA ops): zero-pad, pack column pairs into channels, split row
    # parity, then duplicate the per-window halo so BlockSpec blocks never overlap.
    xp = jnp.pad(x_nhwc, ((0, 0), (1, Hp - H - 1), (1, 1), (0, 0))).astype(jnp.bfloat16)
    ph = xp.reshape(B, half_rows, 2, Wo1, C2)                      # (W+2)*C == Wo1*C2
    ph = jnp.transpose(ph, (0, 2, 1, 3, 4)).reshape(B, 2, half_rows * Wo1, C2)
    row_idx = (jnp.arange(Mt, dtype=jnp.int32)[:, None] * tm_win
               + jnp.arange(L, dtype=jnp.int32)[None, :])          # (Mt, L)
    ph_win = jnp.take(ph, row_idx, axis=2)                         # (B, 2, Mt, L, C2)

    # Weights (Cout, Cin, 3, 3) -> (3, 2, C2, Cout_pad); K layout [kw0|kw1] / [kw2|0].
    wt = jnp.transpose(w_oihw, (2, 3, 1, 0))                       # (3, 3, C, Cout)
    w_a = jnp.concatenate([wt[:, 0], wt[:, 1]], axis=1)            # (3, 2C, Cout)
    w_b = jnp.concatenate([wt[:, 2], jnp.zeros_like(wt[:, 2])], axis=1)
    w_all = jnp.stack([w_a, w_b], axis=1)                          # (3, 2, 2C, Cout)
    w_all = jnp.pad(w_all, ((0, 0), (0, 0), (0, 0), (0, Cout_pad - Cout))).astype(jnp.bfloat16)
    b_pad = jnp.pad(bias, (0, Cout_pad - Cout)).astype(jnp.float32).reshape(1, Cout_pad)

    flops = 2 * B * M_pad * 6 * C2 * Cout_pad
    bytes_accessed = int(
        B * 2 * Mt * L * C2 * 2 + w_all.size * 2 + b_pad.size * 4
        + B * M_pad * Cout_pad * jnp.dtype(out_dtype).itemsize)

    out = pl.pallas_call(
        functools.partial(_conv3x3s2_kernel, Wo1),
        out_shape=jax.ShapeDtypeStruct((B, M_pad, Cout_pad), out_dtype),
        grid_spec=pltpu.PrefetchScalarGridSpec(
            num_scalar_prefetch=0,
            grid=(B, Mt),
            in_specs=[
                # Phase window: changes every step -> auto-pipelined/prefetched.
                pl.BlockSpec((None, 2, None, L, C2), lambda b, m: (b, 0, m, 0, 0)),
                # Weights / bias: constant block index -> fetched once, resident.
                pl.BlockSpec((3, 2, C2, Cout_pad), lambda b, m: (0, 0, 0, 0)),
                pl.BlockSpec((1, Cout_pad), lambda b, m: (0, 0)),
            ],
            out_specs=pl.BlockSpec((None, tm_win, Cout_pad), lambda b, m: (b, m, 0)),
        ),
        compiler_params=pltpu.CompilerParams(
            dimension_semantics=("parallel", "parallel"),
            vmem_limit_bytes=32 * 1024 * 1024,
        ),
        cost_estimate=pl.CostEstimate(
            flops=flops, transcendentals=0, bytes_accessed=bytes_accessed),
    )(ph_win, w_all, b_pad)

    # Epilogue: drop row padding, the garbage j'==Wo column, and channel padding.
    out = out[:, :M_valid, :Cout].reshape(B, Ho, Wo1, Cout)[:, :, :Wo, :]
    return out


# ---------------------------------------------------------------------------
# Module
# ---------------------------------------------------------------------------
class OverlapPatchEmbedding:
    def __init__(self, image_size, patch_size, embed_dim, channels, key):
        if image_size[0] % patch_size != 0 or image_size[1] % patch_size != 0:
            raise ValueError("image dimensions must be divisible by the patch size")
        self.grid_size = (image_size[0] // patch_size, image_size[1] // patch_size)
        self.num_patches = self.grid_size[0] * self.grid_size[1]
        n_layers = int(math.log2(patch_size))
        dims = [channels] + [embed_dim] * (n_layers - 1)
        self.params = []
        for i in range(n_layers):
            kw_, kb_ = jax.random.split(jax.random.fold_in(key, i))
            cin = dims[i]
            bound = 1.0 / math.sqrt(cin * 9)   # same scale as torch default conv init
            w = jax.random.uniform(kw_, (embed_dim, cin, 3, 3), jnp.float32, -bound, bound)
            b = jax.random.uniform(kb_, (embed_dim,), jnp.float32, -bound, bound)
            self.params.append((w, b))
        # NOTE: the torch module defines InstanceNorm2d but never applies it in forward.

    def __call__(self, im_nchw):
        x = jnp.transpose(im_nchw, (0, 2, 3, 1))          # NCHW -> NHWC
        n = len(self.params)
        for i, (w, b) in enumerate(self.params):
            out_dtype = jnp.float32 if i == n - 1 else jnp.bfloat16
            x = downsample_conv_block(x, w, b, out_dtype=out_dtype)
        B, Ho, Wo, C = x.shape
        # NHWC (B,Ho,Wo,C) -> (B, Ho*Wo, C)  == torch flatten(2).transpose(1,2) on NCHW
        return x.reshape(B, Ho * Wo, C)


# ---------------------------------------------------------------------------
# Plain-JAX reference (emulates the kernel's bf16-in / f32-accumulate path)
# ---------------------------------------------------------------------------
def reference_forward(im_nchw, params):
    x = im_nchw
    n = len(params)
    for i, (w, b) in enumerate(params):
        xb = x.astype(jnp.bfloat16).astype(jnp.float32)
        wb = w.astype(jnp.bfloat16).astype(jnp.float32)
        y = lax.conv_general_dilated(
            xb, wb, window_strides=(2, 2), padding=((1, 1), (1, 1)),
            dimension_numbers=("NCHW", "OIHW", "NCHW"))
        y = y + b.reshape(1, -1, 1, 1)
        y = jnp.where(y >= 0, y, NEG_SLOPE * y)
        x = y if i == n - 1 else y.astype(jnp.bfloat16).astype(jnp.float32)
    B, C, H, W = x.shape
    return jnp.transpose(x.reshape(B, C, H * W), (0, 2, 1))


if __name__ == "__main__":
    key = jax.random.PRNGKey(0)
    k_im, k_par = jax.random.split(key)

    B, C, H, W = 2, 4, 16, 16
    patch_size, embed_dim = 4, 32             # -> 2 DownSampleConvBlocks, output (B, 16, 32)
    im = jax.random.normal(k_im, (B, C, H, W), jnp.float32)

    module = OverlapPatchEmbedding((H, W), patch_size, embed_dim, C, k_par)
    fwd = jax.jit(lambda x: module(x))
    out = jax.block_until_ready(fwd(im))

    assert out.shape == (B, module.num_patches, embed_dim), out.shape
    assert out.dtype == jnp.float32, out.dtype

    ref = jax.block_until_ready(reference_forward(im, module.params))
    err = float(jnp.max(jnp.abs(out - ref)))
    assert jnp.allclose(out, ref, atol=1e-2, rtol=1e-2), err

    print("KERNEL_OK")
</pallas_src>

<mosaic_0001>
module attributes {stable_mosaic.version = 11 : i64} {
  func.func @_conv3x3s2_kernel(%arg0: i32, %arg1: i32, %arg2: memref<1x2x1x266x8xbf16, #tpu.memory_space<vmem>>, %arg3: memref<3x2x8x128xbf16, #tpu.memory_space<vmem>>, %arg4: memref<1x128xf32, #tpu.memory_space<vmem>>, %arg5: memref<1x256x128xbf16, #tpu.memory_space<vmem>>) attributes {dimension_semantics = [#tpu.dimension_semantics<parallel>, #tpu.dimension_semantics<parallel>], iteration_bounds = array<i64: 2, 1>, scalar_prefetch = 0 : i64, scratch_operands = 0 : i64, tpu.core_type = #tpu.core_type<tc>, window_params = [{transform_indices = @transform_0, window_bounds = array<i64: 1, 2, 1, 266, 8>}, {pipeline_mode = #tpu.pipeline_mode<synchronous>, transform_indices = @transform_1, window_bounds = array<i64: 3, 2, 8, 128>}, {pipeline_mode = #tpu.pipeline_mode<synchronous>, transform_indices = @transform_2, window_bounds = array<i64: 1, 128>}, {transform_indices = @transform_3, window_bounds = array<i64: 1, 256, 128>}]} {
    %cst = arith.constant 0.000000e+00 : f32
    %0 = vector.broadcast %cst : f32 to vector<256x128xf32>
    %c0 = arith.constant 0 : index
    %c0_0 = arith.constant 0 : index
    %c0_1 = arith.constant 0 : index
    %c0_2 = arith.constant 0 : index
    %c0_3 = arith.constant 0 : index
    %1 = vector.load %arg2[%c0, %c0_0, %c0_1, %c0_2, %c0_3] : memref<1x2x1x266x8xbf16, #tpu.memory_space<vmem>>, vector<1x1x1x256x8xbf16>
    %2 = vector.shape_cast %1 : vector<1x1x1x256x8xbf16> to vector<256x8xbf16>
    %c0_4 = arith.constant 0 : index
    %c0_5 = arith.constant 0 : index
    %c0_6 = arith.constant 0 : index
    %c1 = arith.constant 1 : index
    %c0_7 = arith.constant 0 : index
    %3 = vector.load %arg2[%c0_4, %c0_5, %c0_6, %c1, %c0_7] : memref<1x2x1x266x8xbf16, #tpu.memory_space<vmem>>, vector<1x1x1x256x8xbf16>
    %4 = vector.shape_cast %3 : vector<1x1x1x256x8xbf16> to vector<256x8xbf16>
    %c0_8 = arith.constant 0 : index
    %c0_9 = arith.constant 0 : index
    %c0_10 = arith.constant 0 : index
    %c0_11 = arith.constant 0 : index
    %5 = vector.load %arg3[%c0_8, %c0_9, %c0_10, %c0_11] : memref<3x2x8x128xbf16, #tpu.memory_space<vmem>>, vector<1x1x8x128xbf16>
    %6 = vector.shape_cast %5 : vector<1x1x8x128xbf16> to vector<8x128xbf16>
    %cst_12 = arith.constant dense<0.000000e+00> : vector<256x128xf32>
    %7 = tpu.matmul %2, %6, %cst_12 {dimension_numbers = #tpu.dot_dimension_numbers<[1], [0], [0], [1], [0, 0, 1, 1], [], []>} : vector<256x8xbf16>, vector<8x128xbf16>, vector<256x128xf32> -> vector<256x128xf32>
    %8 = arith.addf %0, %7 : vector<256x128xf32>
    %c0_13 = arith.constant 0 : index
    %c1_14 = arith.constant 1 : index
    %c0_15 = arith.constant 0 : index
    %c0_16 = arith.constant 0 : index
    %9 = vector.load %arg3[%c0_13, %c1_14, %c0_15, %c0_16] : memref<3x2x8x128xbf16, #tpu.memory_space<vmem>>, vector<1x1x8x128xbf16>
    %10 = vector.shape_cast %9 : vector<1x1x8x128xbf16> to vector<8x128xbf16>
    %cst_17 = arith.constant dense<0.000000e+00> : vector<256x128xf32>
    %11 = tpu.matmul %4, %10, %cst_17 {dimension_numbers = #tpu.dot_dimension_numbers<[1], [0], [0], [1], [0, 0, 1, 1], [], []>} : vector<256x8xbf16>, vector<8x128xbf16>, vector<256x128xf32> -> vector<256x128xf32>
    %12 = arith.addf %8, %11 : vector<256x128xf32>
    %c0_18 = arith.constant 0 : index
    %c1_19 = arith.constant 1 : index
    %c0_20 = arith.constant 0 : index
    %c0_21 = arith.constant 0 : index
    %c0_22 = arith.constant 0 : index
    %13 = vector.load %arg2[%c0_18, %c1_19, %c0_20, %c0_21, %c0_22] : memref<1x2x1x266x8xbf16, #tpu.memory_space<vmem>>, vector<1x1x1x256x8xbf16>
    %14 = vector.shape_cast %13 : vector<1x1x1x256x8xbf16> to vector<256x8xbf16>
    %c0_23 = arith.constant 0 : index
    %c1_24 = arith.constant 1 : index
    %c0_25 = arith.constant 0 : index
    %c1_26 = arith.constant 1 : index
    %c0_27 = arith.constant 0 : index
    %15 = vector.load %arg2[%c0_23, %c1_24, %c0_25, %c1_26, %c0_27] : memref<1x2x1x266x8xbf16, #tpu.memory_space<vmem>>, vector<1x1x1x256x8xbf16>
    %16 = vector.shape_cast %15 : vector<1x1x1x256x8xbf16> to vector<256x8xbf16>
    %c1_28 = arith.constant 1 : index
    %c0_29 = arith.constant 0 : index
    %c0_30 = arith.constant 0 : index
    %c0_31 = arith.constant 0 : index
    %17 = vector.load %arg3[%c1_28, %c0_29, %c0_30, %c0_31] : memref<3x2x8x128xbf16, #tpu.memory_space<vmem>>, vector<1x1x8x128xbf16>
    %18 = vector.shape_cast %17 : vector<1x1x8x128xbf16> to vector<8x128xbf16>
    %cst_32 = arith.constant dense<0.000000e+00> : vector<256x128xf32>
    %19 = tpu.matmul %14, %18, %cst_32 {dimension_numbers = #tpu.dot_dimension_numbers<[1], [0], [0], [1], [0, 0, 1, 1], [], []>} : vector<256x8xbf16>, vector<8x128xbf16>, vector<256x128xf32> -> vector<256x128xf32>
    %20 = arith.addf %12, %19 : vector<256x128xf32>
    %c1_33 = arith.constant 1 : index
    %c1_34 = arith.constant 1 : index
    %c0_35 = arith.constant 0 : index
    %c0_36 = arith.constant 0 : index
    %21 = vector.load %arg3[%c1_33, %c1_34, %c0_35, %c0_36] : memref<3x2x8x128xbf16, #tpu.memory_space<vmem>>, vector<1x1x8x128xbf16>
    %22 = vector.shape_cast %21 : vector<1x1x8x128xbf16> to vector<8x128xbf16>
    %cst_37 = arith.constant dense<0.000000e+00> : vector<256x128xf32>
    %23 = tpu.matmul %16, %22, %cst_37 {dimension_numbers = #tpu.dot_dimension_numbers<[1], [0], [0], [1], [0, 0, 1, 1], [], []>} : vector<256x8xbf16>, vector<8x128xbf16>, vector<256x128xf32> -> vector<256x128xf32>
    %24 = arith.addf %20, %23 : vector<256x128xf32>
    %c0_38 = arith.constant 0 : index
    %c0_39 = arith.constant 0 : index
    %c0_40 = arith.constant 0 : index
    %c9 = arith.constant 9 : index
    %c0_41 = arith.constant 0 : index
    %25 = vector.load %arg2[%c0_38, %c0_39, %c0_40, %c9, %c0_41] : memref<1x2x1x266x8xbf16, #tpu.memory_space<vmem>>, vector<1x1x1x256x8xbf16>
    %26 = vector.shape_cast %25 : vector<1x1x1x256x8xbf16> to vector<256x8xbf16>
    %c0_42 = arith.constant 0 : index
    %c0_43 = arith.constant 0 : index
    %c0_44 = arith.constant 0 : index
    %c10 = arith.constant 10 : index
    %c0_45 = arith.constant 0 : index
    %27 = vector.load %arg2[%c0_42, %c0_43, %c0_44, %c10, %c0_45] : memref<1x2x1x266x8xbf16, #tpu.memory_space<vmem>>, vector<1x1x1x256x8xbf16>
    %28 = vector.shape_cast %27 : vector<1x1x1x256x8xbf16> to vector<256x8xbf16>
    %c2 = arith.constant 2 : index
    %c0_46 = arith.constant 0 : index
    %c0_47 = arith.constant 0 : index
    %c0_48 = arith.constant 0 : index
    %29 = vector.load %arg3[%c2, %c0_46, %c0_47, %c0_48] : memref<3x2x8x128xbf16, #tpu.memory_space<vmem>>, vector<1x1x8x128xbf16>
    %30 = vector.shape_cast %29 : vector<1x1x8x128xbf16> to vector<8x128xbf16>
    %cst_49 = arith.constant dense<0.000000e+00> : vector<256x128xf32>
    %31 = tpu.matmul %26, %30, %cst_49 {dimension_numbers = #tpu.dot_dimension_numbers<[1], [0], [0], [1], [0, 0, 1, 1], [], []>} : vector<256x8xbf16>, vector<8x128xbf16>, vector<256x128xf32> -> vector<256x128xf32>
    %32 = arith.addf %24, %31 : vector<256x128xf32>
    %c2_50 = arith.constant 2 : index
    %c1_51 = arith.constant 1 : index
    %c0_52 = arith.constant 0 : index
    %c0_53 = arith.constant 0 : index
    %33 = vector.load %arg3[%c2_50, %c1_51, %c0_52, %c0_53] : memref<3x2x8x128xbf16, #tpu.memory_space<vmem>>, vector<1x1x8x128xbf16>
    %34 = vector.shape_cast %33 : vector<1x1x8x128xbf16> to vector<8x128xbf16>
    %cst_54 = arith.constant dense<0.000000e+00> : vector<256x128xf32>
    %35 = tpu.matmul %28, %34, %cst_54 {dimension_numbers = #tpu.dot_dimension_numbers<[1], [0], [0], [1], [0, 0, 1, 1], [], []>} : vector<256x8xbf16>, vector<8x128xbf16>, vector<256x128xf32> -> vector<256x128xf32>
    %36 = arith.addf %32, %35 : vector<256x128xf32>
    %c0_55 = arith.constant 0 : index
    %c0_56 = arith.constant 0 : index
    %37 = vector.load %arg4[%c0_55, %c0_56] : memref<1x128xf32, #tpu.memory_space<vmem>>, vector<1x128xf32>
    %38 = vector.broadcast %37 : vector<1x128xf32> to vector<256x128xf32>
    %39 = arith.addf %36, %38 : vector<256x128xf32>
    %cst_57 = arith.constant 0.000000e+00 : f32
    %40 = vector.broadcast %cst_57 : f32 to vector<256x128xf32>
    %41 = arith.cmpf oge, %39, %40 : vector<256x128xf32>
    %cst_58 = arith.constant 0.00999999977 : f32
    %42 = vector.broadcast %cst_58 : f32 to vector<256x128xf32>
    %43 = arith.mulf %42, %39 : vector<256x128xf32>
    %44 = arith.select %41, %39, %43 : vector<256x128xi1>, vector<256x128xf32>
    %45 = arith.truncf %44 : vector<256x128xf32> to vector<256x128xbf16>
    %c0_59 = arith.constant 0 : index
    %c0_60 = arith.constant 0 : index
    %c0_61 = arith.constant 0 : index
    %46 = vector.load %arg5[%c0_59, %c0_60, %c0_61] : memref<1x256x128xbf16, #tpu.memory_space<vmem>>, vector<1x256x128xbf16>
    %47 = vector.shape_cast %46 : vector<1x256x128xbf16> to vector<256x128xbf16>
    %48 = vector.shape_cast %45 : vector<256x128xbf16> to vector<1x256x128xbf16>
    tpu.vector_store %arg5[%c0_59, %c0_60, %c0_61], %48 {strides = array<i32>} : memref<1x256x128xbf16, #tpu.memory_space<vmem>>, vector<1x256x128xbf16>,
    return
  }
  func.func @transform_0(%arg0: i32, %arg1: i32) -> (i32, i32, i32, i32, i32) {
    %c0_i32 = arith.constant 0 : i32
    %c0_i32_0 = arith.constant 0 : i32
    %c0_i32_1 = arith.constant 0 : i32
    %c0_i32_2 = arith.constant 0 : i32
    return %arg0, %c0_i32, %arg1, %c0_i32_0, %c0_i32_1 : i32, i32, i32, i32, i32
  }
  func.func @transform_1(%arg0: i32, %arg1: i32) -> (i32, i32, i32, i32) {
    %c0_i32 = arith.constant 0 : i32
    %c0_i32_0 = arith.constant 0 : i32
    %c0_i32_1 = arith.constant 0 : i32
    %c0_i32_2 = arith.constant 0 : i32
    %c0_i32_3 = arith.constant 0 : i32
    return %c0_i32, %c0_i32_0, %c0_i32_1, %c0_i32_2 : i32, i32, i32, i32
  }
  func.func @transform_2(%arg0: i32, %arg1: i32) -> (i32, i32) {
    %c0_i32 = arith.constant 0 : i32
    %c0_i32_0 = arith.constant 0 : i32
    %c0_i32_1 = arith.constant 0 : i32
    return %c0_i32, %c0_i32_0 : i32, i32
  }
  func.func @transform_3(%arg0: i32, %arg1: i32) -> (i32, i32, i32) {
    %c0_i32 = arith.constant 0 : i32
    %c0_i32_0 = arith.constant 0 : i32
    return %arg0, %arg1, %c0_i32 : i32, i32, i32
  }
}

module attributes {stable_mosaic.version = 11 : i64} {
  func.func @_conv3x3s2_kernel(%arg0: i32, %arg1: i32, %arg2: memref<1x2x1x262x64xbf16, #tpu.memory_space<vmem>>, %arg3: memref<3x2x64x128xbf16, #tpu.memory_space<vmem>>, %arg4: memref<1x128xf32, #tpu.memory_space<vmem>>, %arg5: memref<1x256x128xf32, #tpu.memory_space<vmem>>) attributes {dimension_semantics = [#tpu.dimension_semantics<parallel>, #tpu.dimension_semantics<parallel>], iteration_bounds = array<i64: 2, 1>, scalar_prefetch = 0 : i64, scratch_operands = 0 : i64, tpu.core_type = #tpu.core_type<tc>, window_params = [{transform_indices = @transform_0, window_bounds = array<i64: 1, 2, 1, 262, 64>}, {pipeline_mode = #tpu.pipeline_mode<synchronous>, transform_indices = @transform_1, window_bounds = array<i64: 3, 2, 64, 128>}, {pipeline_mode = #tpu.pipeline_mode<synchronous>, transform_indices = @transform_2, window_bounds = array<i64: 1, 128>}, {transform_indices = @transform_3, window_bounds = array<i64: 1, 256, 128>}]} {
    %cst = arith.constant 0.000000e+00 : f32
    %0 = vector.broadcast %cst : f32 to vector<256x128xf32>
    %c0 = arith.constant 0 : index
    %c0_0 = arith.constant 0 : index
    %c0_1 = arith.constant 0 : index
    %c0_2 = arith.constant 0 : index
    %c0_3 = arith.constant 0 : index
    %1 = vector.load %arg2[%c0, %c0_0, %c0_1, %c0_2, %c0_3] : memref<1x2x1x262x64xbf16, #tpu.memory_space<vmem>>, vector<1x1x1x256x64xbf16>
    %2 = vector.shape_cast %1 : vector<1x1x1x256x64xbf16> to vector<256x64xbf16>
    %c0_4 = arith.constant 0 : index
    %c0_5 = arith.constant 0 : index
    %c0_6 = arith.constant 0 : index
    %c1 = arith.constant 1 : index
    %c0_7 = arith.constant 0 : index
    %3 = vector.load %arg2[%c0_4, %c0_5, %c0_6, %c1, %c0_7] : memref<1x2x1x262x64xbf16, #tpu.memory_space<vmem>>, vector<1x1x1x256x64xbf16>
    %4 = vector.shape_cast %3 : vector<1x1x1x256x64xbf16> to vector<256x64xbf16>
    %c0_8 = arith.constant 0 : index
    %c0_9 = arith.constant 0 : index
    %c0_10 = arith.constant 0 : index
    %c0_11 = arith.constant 0 : index
    %5 = vector.load %arg3[%c0_8, %c0_9, %c0_10, %c0_11] : memref<3x2x64x128xbf16, #tpu.memory_space<vmem>>, vector<1x1x64x128xbf16>
    %6 = vector.shape_cast %5 : vector<1x1x64x128xbf16> to vector<64x128xbf16>
    %cst_12 = arith.constant dense<0.000000e+00> : vector<256x128xf32>
    %7 = tpu.matmul %2, %6, %cst_12 {dimension_numbers = #tpu.dot_dimension_numbers<[1], [0], [0], [1], [0, 0, 1, 1], [], []>} : vector<256x64xbf16>, vector<64x128xbf16>, vector<256x128xf32> -> vector<256x128xf32>
    %8 = arith.addf %0, %7 : vector<256x128xf32>
    %c0_13 = arith.constant 0 : index
    %c1_14 = arith.constant 1 : index
    %c0_15 = arith.constant 0 : index
    %c0_16 = arith.constant 0 : index
    %9 = vector.load %arg3[%c0_13, %c1_14, %c0_15, %c0_16] : memref<3x2x64x128xbf16, #tpu.memory_space<vmem>>, vector<1x1x64x128xbf16>
    %10 = vector.shape_cast %9 : vector<1x1x64x128xbf16> to vector<64x128xbf16>
    %cst_17 = arith.constant dense<0.000000e+00> : vector<256x128xf32>
    %11 = tpu.matmul %4, %10, %cst_17 {dimension_numbers = #tpu.dot_dimension_numbers<[1], [0], [0], [1], [0, 0, 1, 1], [], []>} : vector<256x64xbf16>, vector<64x128xbf16>, vector<256x128xf32> -> vector<256x128xf32>
    %12 = arith.addf %8, %11 : vector<256x128xf32>
    %c0_18 = arith.constant 0 : index
    %c1_19 = arith.constant 1 : index
    %c0_20 = arith.constant 0 : index
    %c0_21 = arith.constant 0 : index
    %c0_22 = arith.constant 0 : index
    %13 = vector.load %arg2[%c0_18, %c1_19, %c0_20, %c0_21, %c0_22] : memref<1x2x1x262x64xbf16, #tpu.memory_space<vmem>>, vector<1x1x1x256x64xbf16>
    %14 = vector.shape_cast %13 : vector<1x1x1x256x64xbf16> to vector<256x64xbf16>
    %c0_23 = arith.constant 0 : index
    %c1_24 = arith.constant 1 : index
    %c0_25 = arith.constant 0 : index
    %c1_26 = arith.constant 1 : index
    %c0_27 = arith.constant 0 : index
    %15 = vector.load %arg2[%c0_23, %c1_24, %c0_25, %c1_26, %c0_27] : memref<1x2x1x262x64xbf16, #tpu.memory_space<vmem>>, vector<1x1x1x256x64xbf16>
    %16 = vector.shape_cast %15 : vector<1x1x1x256x64xbf16> to vector<256x64xbf16>
    %c1_28 = arith.constant 1 : index
    %c0_29 = arith.constant 0 : index
    %c0_30 = arith.constant 0 : index
    %c0_31 = arith.constant 0 : index
    %17 = vector.load %arg3[%c1_28, %c0_29, %c0_30, %c0_31] : memref<3x2x64x128xbf16, #tpu.memory_space<vmem>>, vector<1x1x64x128xbf16>
    %18 = vector.shape_cast %17 : vector<1x1x64x128xbf16> to vector<64x128xbf16>
    %cst_32 = arith.constant dense<0.000000e+00> : vector<256x128xf32>
    %19 = tpu.matmul %14, %18, %cst_32 {dimension_numbers = #tpu.dot_dimension_numbers<[1], [0], [0], [1], [0, 0, 1, 1], [], []>} : vector<256x64xbf16>, vector<64x128xbf16>, vector<256x128xf32> -> vector<256x128xf32>
    %20 = arith.addf %12, %19 : vector<256x128xf32>
    %c1_33 = arith.constant 1 : index
    %c1_34 = arith.constant 1 : index
    %c0_35 = arith.constant 0 : index
    %c0_36 = arith.constant 0 : index
    %21 = vector.load %arg3[%c1_33, %c1_34, %c0_35, %c0_36] : memref<3x2x64x128xbf16, #tpu.memory_space<vmem>>, vector<1x1x64x128xbf16>
    %22 = vector.shape_cast %21 : vector<1x1x64x128xbf16> to vector<64x128xbf16>
    %cst_37 = arith.constant dense<0.000000e+00> : vector<256x128xf32>
    %23 = tpu.matmul %16, %22, %cst_37 {dimension_numbers = #tpu.dot_dimension_numbers<[1], [0], [0], [1], [0, 0, 1, 1], [], []>} : vector<256x64xbf16>, vector<64x128xbf16>, vector<256x128xf32> -> vector<256x128xf32>
    %24 = arith.addf %20, %23 : vector<256x128xf32>
    %c0_38 = arith.constant 0 : index
    %c0_39 = arith.constant 0 : index
    %c0_40 = arith.constant 0 : index
    %c5 = arith.constant 5 : index
    %c0_41 = arith.constant 0 : index
    %25 = vector.load %arg2[%c0_38, %c0_39, %c0_40, %c5, %c0_41] : memref<1x2x1x262x64xbf16, #tpu.memory_space<vmem>>, vector<1x1x1x256x64xbf16>
    %26 = vector.shape_cast %25 : vector<1x1x1x256x64xbf16> to vector<256x64xbf16>
    %c0_42 = arith.constant 0 : index
    %c0_43 = arith.constant 0 : index
    %c0_44 = arith.constant 0 : index
    %c6 = arith.constant 6 : index
    %c0_45 = arith.constant 0 : index
    %27 = vector.load %arg2[%c0_42, %c0_43, %c0_44, %c6, %c0_45] : memref<1x2x1x262x64xbf16, #tpu.memory_space<vmem>>, vector<1x1x1x256x64xbf16>
    %28 = vector.shape_cast %27 : vector<1x1x1x256x64xbf16> to vector<256x64xbf16>
    %c2 = arith.constant 2 : index
    %c0_46 = arith.constant 0 : index
    %c0_47 = arith.constant 0 : index
    %c0_48 = arith.constant 0 : index
    %29 = vector.load %arg3[%c2, %c0_46, %c0_47, %c0_48] : memref<3x2x64x128xbf16, #tpu.memory_space<vmem>>, vector<1x1x64x128xbf16>
    %30 = vector.shape_cast %29 : vector<1x1x64x128xbf16> to vector<64x128xbf16>
    %cst_49 = arith.constant dense<0.000000e+00> : vector<256x128xf32>
    %31 = tpu.matmul %26, %30, %cst_49 {dimension_numbers = #tpu.dot_dimension_numbers<[1], [0], [0], [1], [0, 0, 1, 1], [], []>} : vector<256x64xbf16>, vector<64x128xbf16>, vector<256x128xf32> -> vector<256x128xf32>
    %32 = arith.addf %24, %31 : vector<256x128xf32>
    %c2_50 = arith.constant 2 : index
    %c1_51 = arith.constant 1 : index
    %c0_52 = arith.constant 0 : index
    %c0_53 = arith.constant 0 : index
    %33 = vector.load %arg3[%c2_50, %c1_51, %c0_52, %c0_53] : memref<3x2x64x128xbf16, #tpu.memory_space<vmem>>, vector<1x1x64x128xbf16>
    %34 = vector.shape_cast %33 : vector<1x1x64x128xbf16> to vector<64x128xbf16>
    %cst_54 = arith.constant dense<0.000000e+00> : vector<256x128xf32>
    %35 = tpu.matmul %28, %34, %cst_54 {dimension_numbers = #tpu.dot_dimension_numbers<[1], [0], [0], [1], [0, 0, 1, 1], [], []>} : vector<256x64xbf16>, vector<64x128xbf16>, vector<256x128xf32> -> vector<256x128xf32>
    %36 = arith.addf %32, %35 : vector<256x128xf32>
    %c0_55 = arith.constant 0 : index
    %c0_56 = arith.constant 0 : index
    %37 = vector.load %arg4[%c0_55, %c0_56] : memref<1x128xf32, #tpu.memory_space<vmem>>, vector<1x128xf32>
    %38 = vector.broadcast %37 : vector<1x128xf32> to vector<256x128xf32>
    %39 = arith.addf %36, %38 : vector<256x128xf32>
    %cst_57 = arith.constant 0.000000e+00 : f32
    %40 = vector.broadcast %cst_57 : f32 to vector<256x128xf32>
    %41 = arith.cmpf oge, %39, %40 : vector<256x128xf32>
    %cst_58 = arith.constant 0.00999999977 : f32
    %42 = vector.broadcast %cst_58 : f32 to vector<256x128xf32>
    %43 = arith.mulf %42, %39 : vector<256x128xf32>
    %44 = arith.select %41, %39, %43 : vector<256x128xi1>, vector<256x128xf32>
    %c0_59 = arith.constant 0 : index
    %c0_60 = arith.constant 0 : index
    %c0_61 = arith.constant 0 : index
    %45 = vector.load %arg5[%c0_59, %c0_60, %c0_61] : memref<1x256x128xf32, #tpu.memory_space<vmem>>, vector<1x256x128xf32>
    %46 = vector.shape_cast %45 : vector<1x256x128xf32> to vector<256x128xf32>
    %47 = vector.shape_cast %44 : vector<256x128xf32> to vector<1x256x128xf32>
    tpu.vector_store %arg5[%c0_59, %c0_60, %c0_61], %47 {strides = array<i32>} : memref<1x256x128xf32, #tpu.memory_space<vmem>>, vector<1x256x128xf32>,
    return
  }
  func.func @transform_0(%arg0: i32, %arg1: i32) -> (i32, i32, i32, i32, i32) {
    %c0_i32 = arith.constant 0 : i32
    %c0_i32_0 = arith.constant 0 : i32
    %c0_i32_1 = arith.constant 0 : i32
    %c0_i32_2 = arith.constant 0 : i32
    return %arg0, %c0_i32, %arg1, %c0_i32_0, %c0_i32_1 : i32, i32, i32, i32, i32
  }
  func.func @transform_1(%arg0: i32, %arg1: i32) -> (i32, i32, i32, i32) {
    %c0_i32 = arith.constant 0 : i32
    %c0_i32_0 = arith.constant 0 : i32
    %c0_i32_1 = arith.constant 0 : i32
    %c0_i32_2 = arith.constant 0 : i32
    %c0_i32_3 = arith.constant 0 : i32
    return %c0_i32, %c0_i32_0, %c0_i32_1, %c0_i32_2 : i32, i32, i32, i32
  }
  func.func @transform_2(%arg0: i32, %arg1: i32) -> (i32, i32) {
    %c0_i32 = arith.constant 0 : i32
    %c0_i32_0 = arith.constant 0 : i32
    %c0_i32_1 = arith.constant 0 : i32
    return %c0_i32, %c0_i32_0 : i32, i32
  }
  func.func @transform_3(%arg0: i32, %arg1: i32) -> (i32, i32, i32) {
    %c0_i32 = arith.constant 0 : i32
    %c0_i32_0 = arith.constant 0 : i32
    return %arg0, %arg1, %c0_i32 : i32, i32, i32
  }
}

</mosaic_0001>

<bundles_post_ra>
// kernel: _lambda_.2
= control target key start
LH: loop header
LB: loop body
LE: loop exit
PB: predicated region body
PF: predicated region fallthrough
CT: control target
= control target key end

     0   :  { %s3709_s12 = smov 0   ;;  %s3711_s13 = smov 0   ;;  %s4340_s0 = inlined_call_operand.vmem [shape: bf16[2,2,1,266,8], index: 0, kind: input, shape index: {}]   ;;  %s4341_s1 = inlined_call_operand.vmem [shape: bf16[3,2,8,128], index: 1, kind: input, shape index: {}]   ;;  %s4342_s2 = inlined_call_operand.vmem [shape: f32[1,128], index: 2, kind: input, shape index: {}]   ;;  %s4343_s3 = inlined_call_operand.vmem [shape: bf16[2,256,128], index: 3, kind: output, shape index: {}]  }
   0x1   :  { %s3713_s14 = smov 0  }
   0x2 LB: > { %s25_s15 = sadd.s32 1, %s3683_s13  ;;  %p2763_p0 = scmp.ge.s32.totalorder %s3687_s14, 1  ;;  %s3687_s14 = sphi %s3713_s14, %s13_s14   ;;  %s3683_s13 = sphi %s3711_s13, %s4370_s13   ;;  %s3679_s12 = sphi %s3709_s12, %s4369_s12  }
   0x3   : > { %p27_p1 = scmp.ge.s32.totalorder %s25_s15, 2  ;;  %p157_p2 = scmp.lt.s32.totalorder %s3687_s14, 3 }
   0x5   : > { %s4372_s15 = smov (%p27_p1, %s25_s15), 0  ;;  %p158_p3 = pnand %p2763_p0, %p157_p2 }
   0x7   : > { %161 = sbr.rel (%p158_p3) target bundleno = 440 (0x1b8), region = 32 }
   0xe   : > { %v2767_v0 = vld [vmem:[%s4341_s1 + $0x4] sm:$0xf]  ;;  %vm510_vm0 = vcmask 1043456   ;;  %v2883_v1 = vld [vmem:[%s4341_s1 + $0xc] sm:$0xf]  ;;  %p189_p4 = scmp.lt.s32.totalorder %s3679_s12, 1 }
   0xf   : > { %3582 = vmatprep.subr.msk.bf16.mxu1 %vm510_vm0, %v2767_v0  ;;  %3585 = vmatprep.subr.msk.bf16.mxu0 %vm510_vm0, %v2883_v1  ;;  %v512_v2 = vsel %vm510_vm0, %v2767_v0, 0  ;;  %v1401_v3 = vsel %vm510_vm0, %v2883_v1, 0  ;;  %v242_v4 = vld [vmem:[%s4341_s1] sm:$0xf]  ;;  %v2901_v5 = vld [vmem:[%s4341_s1 + $0x10] sm:$0xf] }
  0x10   : > { %3219 = vmatpush3.bf16.msra.mxu1 %v512_v2  ;;  %3321 = vmatpush3.bf16.msra.mxu0 %v1401_v3  ;;  %s4374_s12 = smov (!%p189_p4, %s3679_s12), 1  ;;  %vm328_vm1 = vsmask.f32 7424  ;;  %vm461_vm2 = vcmask 64512   ;;  %v708_v14 = vsel %vm510_vm0, %v242_v4, 0  ;;  %v1896_v15 = vsel %vm510_vm0, %v2901_v5, 0 }
  0x11   : > { %3583 = vmatprep.subr.msk.bf16.mxu1 %vm510_vm0, %v242_v4  ;;  %3586 = vmatprep.subr.msk.bf16.mxu0 %vm510_vm0, %v2901_v5  ;;  %s3588_s24 = smul.u32 272, %s4374_s12  ;;  %v3791_v35 = vld [vmem:[%s4341_s1 + $0x8] sm:$0xf]  ;;  %v3810_v46 = vld [vmem:[%s4341_s1 + $0x14] sm:$0xf]  ;;  %vm2096_vm3 = vcmask 1046528  }
  0x12   : > { %s2988_s7 = sshll.u32 %s4374_s12, 7 }
  0x13   : > { %s3751_s27 = scalar_lea.vmem %s4340_s0, %s3588_s24  ;;  %s4285_s10 = scalar_lea.vmem %s4343_s3, %s2988_s7 }
  0x14   : > { %v3754_v6 = vld [vmem:[%s3751_s27] sm:$0xff]   ;;  %v3757_v7 = vld [vmem:[%s3751_s27 + $0x8] sm:$0xff]   ;;  %v3767_v13 = vld [vmem:[%s3751_s27 + $0x90] sm:$0xff]  }
  0x15   : > { %v330_v8 = vshrl.u32 %v3754_v6, 16  ;;  %v332_v9 = vshll.u32 %v3754_v6, 16  ;;  %v337_v10 = vshll.u32 %v3757_v7, 16  ;;  %v341_v11 = vshrl.u32 %v3757_v7, 16  ;;  %v3764_v12 = vld [vmem:[%s3751_s27 + $0x88] sm:$0xff]   ;;  %v3772_v18 = vld [vmem:[%s3751_s27 + $0x10] sm:$0xff]  }
  0x16   : > { %v3775_v19 = vld [vmem:[%s3751_s27 + $0x98] sm:$0xff]   ;;  %v1236_v20 = vshrl.u32 %v3764_v12, 16  ;;  %v1238_v21 = vshll.u32 %v3764_v12, 16  ;;  %v1242_v22 = vshll.u32 %v3767_v13, 16  ;;  %v1246_v23 = vshrl.u32 %v3767_v13, 16  ;;  %v3796_v39 = vld [vmem:[%s3751_s27 + $0xa0] sm:$0xff]  }
  0x17   : > { %v334_v16 = vrot.slane %v332_v9, 1  ;;  %v339_v17 = vrot.slane %v337_v10, 1  ;;  %v345_v26 = vshll.u32 %v3772_v18, 16  ;;  %v1249_v27 = vshll.u32 %v3775_v19, 16  ;;  %v3784_v30 = vld [vmem:[%s3751_s27 + $0x18] sm:$0xff]   ;;  %v3800_v41 = vld [vmem:[%s3751_s27 + $0x20] sm:$0xff]  }
  0x18   : > { %v1240_v28 = vrot.slane %v1238_v21, 1  ;;  %v1244_v29 = vrot.slane %v1242_v22, 1  ;;  %v349_v31 = vshrl.u32 %v3772_v18, 16  ;;  %v353_v38 = vshll.u32 %v3784_v30, 16  ;;  %v3805_v45 = vld [vmem:[%s3751_s27 + $0xa8] sm:$0xff]   ;;  %v3831_v63 = vld [vmem:[%s3751_s27 + $0xb0] sm:$0xff]  }
  0x19   : > { %v335_v24 = vor.u32 %v334_v16, %v330_v8  ;;  %v343_v25 = vor.u32 %v341_v11, %v339_v17  ;;  %v347_v33 = vrot.slane %v345_v26, 1  ;;  %v1251_v34 = vrot.slane %v1249_v27, 1  ;;  %v3816_v51 = vld [vmem:[%s3751_s27 + $0x28] sm:$0xff]   ;;  %v3835_v1 = vld [vmem:[%s3751_s27 + $0x30] sm:$0xff]   ;;  %v3843_v10 = vld [vmem:[%s3751_s27 + $0xb8] sm:$0xff]  }
  0x1a   : > { %v1241_v36 = vor.u32 %v1240_v28, %v1236_v20  ;;  %v1248_v37 = vor.u32 %v1246_v23, %v1244_v29  ;;  %v1253_v40 = vshrl.u32 %v3775_v19, 16  ;;  %v357_v44 = vshrl.u32 %v3784_v30, 16  ;;  %v3853_v22 = vld [vmem:[%s3751_s27 + $0x38] sm:$0xff]   ;;  %v3856_v23 = vld [vmem:[%s3751_s27 + $0xc0] sm:$0xff]  }
  0x1b   : > { %v340_v32 = vsel %vm328_vm1, %v335_v24, %v339_v17  ;;  %v348_v42 = vsel %vm328_vm1, %v343_v25, %v347_v33  ;;  %v351_v43 = vor.u32 %v349_v31, %v347_v33  ;;  %v355_v49 = vrot.slane %v353_v38, 1  ;;  %v3865_v33 = vld [vmem:[%s3751_s27 + $0x40] sm:$0xff]  }
  0x1c   : > { %3220 = vmatprep.mubr.msk.bf16.mxu1 %vm461_vm2, %v340_v32  ;;  %v1245_v47 = vsel %vm328_vm1, %v1241_v36, %v1244_v29  ;;  %v1252_v48 = vsel %vm328_vm1, %v1248_v37, %v1251_v34  ;;  %v1255_v50 = vor.u32 %v1253_v40, %v1251_v34  ;;  %v1256_v52 = vshll.u32 %v3796_v39, 16  ;;  %v3871_v40 = vld [vmem:[%s3751_s27 + $0xc8] sm:$0xff]  }
  0x1d   : > { %3221 = vmatmul.mubr.msk.bf16.vlgmr.msra.gmra.mrb[0].mxu1 %vm461_vm2, %v348_v42  ;;  %3322 = vmatprep.mubr.msk.bf16.mxu0 %vm461_vm2, %v1245_v47  ;;  %v361_v53 = vshll.u32 %v3800_v41, 16  ;;  %v1260_v54 = vshrl.u32 %v3796_v39, 16  ;;  %v1263_v55 = vshll.u32 %v3805_v45, 16  ;;  %v356_v56 = vsel %vm328_vm1, %v351_v43, %v355_v49  ;;  %v3875_v47 = vld [vmem:[%s3751_s27 + $0x48] sm:$0xff]  }
  0x1e   : > { %3253 = vmatpush3.bf16.msra.mxu1 %v708_v14  ;;  %3323 = vmatmul.mubr.msk.bf16.vlgmr.msra.gmra.mrb[0].mxu0 %vm461_vm2, %v1252_v48  ;;  %v359_v57 = vor.u32 %v357_v44, %v355_v49  ;;  %v365_v58 = vshrl.u32 %v3800_v41, 16  ;;  %v369_v59 = vshll.u32 %v3816_v51, 16  ;;  %v1258_v60 = vrot.slane %v1256_v52, 1 }
  0x1f   : > { %3584 = vmatprep.subr.msk.bf16.mxu1 %vm510_vm0, %v3791_v35  ;;  %3355 = vmatpush3.bf16.msra.mxu0 %v1896_v15  ;;  %v363_v61 = vrot.slane %v361_v53, 1  ;;  %v1265_v62 = vrot.slane %v1263_v55, 1  ;;  %v1267_v0 = vshrl.u32 %v3805_v45, 16  ;;  %v373_v3 = vshrl.u32 %v3816_v51, 16 }
  0x20   : > { %3224 = vmatprep.mubr.msk.bf16.mxu1 %vm461_vm2, %v356_v56  ;;  %v371_v2 = vrot.slane %v369_v59, 1  ;;  %3587 = vmatprep.subr.msk.bf16.mxu0 %vm510_vm0, %v3810_v46  ;;  %v1259_v4 = vsel %vm328_vm1, %v1255_v50, %v1258_v60  ;;  %v1262_v8 = vor.u32 %v1260_v54, %v1258_v60  ;;  %v1270_v14 = vshll.u32 %v3831_v63, 16  ;;  %v3880_v50 = vld [vmem:[%s3751_s27 + $0xd0] sm:$0xff]  }
  0x21   : > { %v364_v5 = vsel %vm328_vm1, %v359_v57, %v363_v61  ;;  %v367_v9 = vor.u32 %v365_v58, %v363_v61  ;;  %3326 = vmatprep.mubr.msk.bf16.mxu0 %vm461_vm2, %v1259_v4  ;;  %v1269_v11 = vor.u32 %v1267_v0, %v1265_v62  ;;  %v377_v15 = vshll.u32 %v3835_v1, 16  ;;  %4351 = vst [vmem:[#allocation2_spill] sm:$0xff] %v3880_v50  ;;  %v3889_v59 = vld [vmem:[%s3751_s27 + $0x50] sm:$0xff]  }
  0x22   : > { %v1266_v16 = vsel %vm328_vm1, %v1262_v8, %v1265_v62  ;;  %v1274_v20 = vshrl.u32 %v3831_v63, 16  ;;  %v1277_v21 = vshll.u32 %v3843_v10, 16  ;;  %v1272_v24 = vrot.slane %v1270_v14, 1  ;;  %v3901_v8 = vld [vmem:[%s3751_s27 + $0x58] sm:$0xff]  }
  0x23   : > { %v372_v17 = vsel %vm328_vm1, %v367_v9, %v371_v2  ;;  %v379_v25 = vrot.slane %v377_v15, 1  ;;  %v381_v26 = vshrl.u32 %v3835_v1, 16  ;;  %v1281_v27 = vshrl.u32 %v3843_v10, 16 }
  0x24   : > { %v375_v28 = vor.u32 %v373_v3, %v371_v2  ;;  %v1279_v29 = vrot.slane %v1277_v21, 1  ;;  %v385_v31 = vshll.u32 %v3853_v22, 16  ;;  %v1284_v32 = vshll.u32 %v3856_v23, 16  ;;  %v3897_v2 = vld [vmem:[%s3751_s27 + $0xd8] sm:$0xff]  }
  0x25   : > { %3225 = vmatmul.mubr.msk.bf16.gmra.mrb[4].mxu1 %vm461_vm2, %v364_v5  ;;  %v1273_v34 = vsel %vm328_vm1, %v1269_v11, %v1272_v24  ;;  %v383_v36 = vor.u32 %v381_v26, %v379_v25  ;;  %v1276_v37 = vor.u32 %v1274_v20, %v1272_v24  ;;  %v393_v44 = vshll.u32 %v3865_v33, 16  ;;  %4352 = vst [vmem:[#allocation3_spill] sm:$0xff] %v3897_v2 }
  0x26   : > { %3228 = vmatprep.mubr.msk.bf16.mxu1 %vm461_vm2, %v372_v17  ;;  %3327 = vmatmul.mubr.msk.bf16.gmra.mrb[4].mxu0 %vm461_vm2, %v1266_v16  ;;  %v387_v38 = vrot.slane %v385_v31, 1  ;;  %v1283_v42 = vor.u32 %v1281_v27, %v1279_v29  ;;  %v1286_v43 = vrot.slane %v1284_v32, 1  ;;  %v380_v48 = vsel %vm328_vm1, %v375_v28, %v379_v25  ;;  %v3906_v16 = vld [vmem:[%s3751_s27 + $0xe0] sm:$0xff]  }
  0x27   : > { %3330 = vmatprep.mubr.msk.bf16.mxu0 %vm461_vm2, %v1273_v34  ;;  %v389_v49 = vshrl.u32 %v3853_v22, 16  ;;  %v1291_v53 = vshll.u32 %v3871_v40, 16  ;;  %v397_v54 = vshrl.u32 %v3865_v33, 16  ;;  %v401_v55 = vshll.u32 %v3875_v47, 16  ;;  %4353 = vst [vmem:[#allocation4_spill] sm:$0xff] %v3906_v16 }
  0x28   : > { %v388_v52 = vsel %vm328_vm1, %v383_v36, %v387_v38  ;;  %v1280_v56 = vsel %vm328_vm1, %v1276_v37, %v1279_v29  ;;  %v395_v57 = vrot.slane %v393_v44, 1  ;;  %v1288_v58 = vshrl.u32 %v3856_v23, 16  ;;  %v3921_v36 = vld [vmem:[%s3751_s27 + $0x60] sm:$0xff]  }
  0x29   : > { %v1287_v60 = vsel %vm328_vm1, %v1283_v42, %v1286_v43  ;;  %v1295_v61 = vshrl.u32 %v3871_v40, 16  ;;  %v1298_v62 = vshll.u32 %v3880_v50, 16  ;;  %v391_v0 = vor.u32 %v389_v49, %v387_v38  ;;  %v3925_v38 = vld [vmem:[%s3751_s27 + $0xe8] sm:$0xff]  }
  0x2a   : > { %v1293_v3 = vrot.slane %v1291_v53, 1  ;;  %v399_v4 = vor.u32 %v397_v54, %v395_v57  ;;  %v403_v5 = vrot.slane %v401_v55, 1  ;;  %v1290_v9 = vor.u32 %v1288_v58, %v1286_v43  ;;  %4354 = vst [vmem:[#allocation5_spill] sm:$0xff] %v3925_v38 }
  0x2b   : > { %v409_v11 = vshll.u32 %v3889_v59, 16  ;;  %v1300_v15 = vrot.slane %v1298_v62, 1  ;;  %v396_v17 = vsel %vm328_vm1, %v391_v0, %v395_v57  ;;  %v405_v20 = vshrl.u32 %v3875_v47, 16  ;;  %v3943_v0 = vld [vmem:[%s3751_s27 + $0x70] sm:$0xff]  }
  0x2c   : > { %v1297_v14 = vor.u32 %v1295_v61, %v1293_v3  ;;  %v1305_v21 = vshll.u32 %v3897_v2, 16  ;;  %v404_v24 = vsel %vm328_vm1, %v399_v4, %v403_v5  ;;  %v413_v25 = vshrl.u32 %v3889_v59, 16 }
  0x2d   : > { %3229 = vmatmul.mubr.msk.bf16.gmra.mrb[8].mxu1 %vm461_vm2, %v380_v48  ;;  %v417_v26 = vshll.u32 %v3901_v8, 16  ;;  %v1294_v27 = vsel %vm328_vm1, %v1290_v9, %v1293_v3  ;;  %v411_v28 = vrot.slane %v409_v11, 1  ;;  %v1302_v29 = vshrl.u32 %v3880_v50, 16  ;;  %v3929_v48 = vld [vmem:[%s3751_s27 + $0x68] sm:$0xff]  }
  0x2e   : > { %3232 = vmatprep.mubr.msk.bf16.mxu1 %vm461_vm2, %v388_v52  ;;  %3331 = vmatmul.mubr.msk.bf16.gmra.mrb[8].mxu0 %vm461_vm2, %v1280_v56  ;;  %v1309_v31 = vshrl.u32 %v3897_v2, 16  ;;  %v1301_v32 = vsel %vm328_vm1, %v1297_v14, %v1300_v15  ;;  %v1312_v34 = vshll.u32 %v3906_v16, 16  ;;  %v407_v37 = vor.u32 %v405_v20, %v403_v5  ;;  %v3933_v52 = vld [vmem:[%s3751_s27 + $0xf0] sm:$0xff]  }
  0x2f   : > { %3334 = vmatprep.mubr.msk.bf16.mxu0 %vm461_vm2, %v1287_v60  ;;  %v1307_v42 = vrot.slane %v1305_v21, 1  ;;  %v415_v43 = vor.u32 %v413_v25, %v411_v28  ;;  %v419_v44 = vrot.slane %v417_v26, 1  ;;  %v1304_v49 = vor.u32 %v1302_v29, %v1300_v15  ;;  %4355 = vst [vmem:[#allocation6_spill] sm:$0xff] %v3933_v52  ;;  %v3952_v15 = vld [vmem:[%s3751_s27 + $0xf8] sm:$0xff]  }
  0x30   : > { %v1314_v54 = vrot.slane %v1312_v34, 1  ;;  %v421_v55 = vshrl.u32 %v3901_v8, 16  ;;  %v425_v56 = vshll.u32 %v3921_v36, 16  ;;  %v412_v57 = vsel %vm328_vm1, %v407_v37, %v411_v28  ;;  %4356 = vst [vmem:[#allocation7_spill] sm:$0xff] %v3952_v15  ;;  %v3965_v37 = vld [vmem:[%s3751_s27 + $0x100] sm:$0xff]  }
  0x31   : > { %v1311_v53 = vor.u32 %v1309_v31, %v1307_v42  ;;  %v1319_v58 = vshll.u32 %v3925_v38, 16  ;;  %v429_v60 = vshrl.u32 %v3921_v36, 16  ;;  %v420_v61 = vsel %vm328_vm1, %v415_v43, %v419_v44  ;;  %4357 = vst [vmem:[#allocation8_spill] sm:$0xff] %v3965_v37 }
  0x32   : > { %v433_v62 = vshll.u32 %v3929_v48, 16  ;;  %v1308_v3 = vsel %vm328_vm1, %v1304_v49, %v1307_v42  ;;  %v1316_v4 = vshrl.u32 %v3906_v16, 16  ;;  %v1326_v5 = vshll.u32 %v3933_v52, 16  ;;  %v1596_v42 = vld [vmem:[%s3751_s27 + $0x4] sm:$0xf] }
  0x33   : > { %v1315_v9 = vsel %vm328_vm1, %v1311_v53, %v1314_v54  ;;  %v427_v11 = vrot.slane %v425_v56, 1  ;;  %v1323_v14 = vshrl.u32 %v3925_v38, 16  ;;  %v1321_v20 = vrot.slane %v1319_v58, 1 }
  0x34   : > { %v437_v25 = vshrl.u32 %v3929_v48, 16  ;;  %v441_v26 = vshll.u32 %v3943_v0, 16  ;;  %v1318_v28 = vor.u32 %v1316_v4, %v1314_v54  ;;  %v1328_v29 = vrot.slane %v1326_v5, 1  ;;  %v3646_v4 = vld [vmem:[%s3751_s27 + $0x108] ss:$0 sps:$4 sm:$0x11]  }
  0x35   : > { %3233 = vmatmul.mubr.msk.bf16.gmra.mrb[12].mxu1 %vm461_vm2, %v396_v17  ;;  %v423_v17 = vor.u32 %v421_v55, %v419_v44  ;;  %v431_v21 = vor.u32 %v429_v60, %v427_v11  ;;  %v1330_v31 = vshrl.u32 %v3933_v52, 16  ;;  %v1333_v34 = vshll.u32 %v3952_v15, 16  ;;  %v3970_v44 = vld [vmem:[%s3751_s27 + $0x8] sm:$0xf]  ;;  %v3985_v5 = vld [vmem:[%s3751_s27 + $0xc] sm:$0xff]  }
  0x36   : > { %3236 = vmatprep.mubr.msk.bf16.mxu1 %vm461_vm2, %v404_v24  ;;  %3335 = vmatmul.mubr.msk.bf16.gmra.mrb[12].mxu0 %vm461_vm2, %v1294_v27  ;;  %v435_v24 = vrot.slane %v433_v62, 1  ;;  %v3959_v27 = vld [vmem:[%s3751_s27 + $0x78] sm:$0xff]   ;;  %v445_v53 = vshrl.u32 %v3943_v0, 16  ;;  %v1322_v55 = vsel %vm328_vm1, %v1318_v28, %v1321_v20  ;;  %v443_v56 = vrot.slane %v441_v26, 1 }
  0x37   : > { %3338 = vmatprep.mubr.msk.bf16.mxu0 %vm461_vm2, %v1301_v32  ;;  %v1325_v32 = vor.u32 %v1323_v14, %v1321_v20  ;;  %v428_v43 = vsel %vm328_vm1, %v423_v17, %v427_v11  ;;  %v449_v54 = vshll.u32 %v3959_v27, 16  ;;  %v1337_v60 = vshrl.u32 %v3952_v15, 16 }
  0x38   : > { %v436_v49 = vsel %vm328_vm1, %v431_v21, %v435_v24  ;;  %v2902_v62 = vcombine.low %v1596_v42, %v3970_v44  ;;  %v447_v11 = vor.u32 %v445_v53, %v443_v56  ;;  %v1332_v17 = vor.u32 %v1330_v31, %v1328_v29 }
  0x39   : > { %v1329_v58 = vsel %vm328_vm1, %v1325_v32, %v1328_v29  ;;  %v451_v14 = vrot.slane %v449_v54, 1  ;;  %v453_v32 = vshrl.u32 %v3959_v27, 16  ;;  %v1348_v53 = vshll.u32 %v3646_v4, 16 }
  0x3a   : > { %v1718_v26 = vshll.u32 %v2902_v62, 16  ;;  %v1716_v31 = vshrl.u32 %v2902_v62, 16 }
  0x3b   : > { %v452_v42 = vsel %vm328_vm1, %v447_v11, %v451_v14  ;;  %v1350_v62 = vrot.slane %v1348_v53, 1 }
  0x3c   : > { %v1720_v54 = vrot.slane %v1718_v26, 1 }
  0x3d   : > { %3237 = vmatmul.mubr.msk.bf16.gmra.mrb[16].mxu1 %vm461_vm2, %v412_v57  ;;  %v3645_v57 = vld [vmem:[%s3751_s27 + $0x80] ss:$0 sps:$4 sm:$0x11]  }
  0x3e   : > { %3240 = vmatprep.mubr.msk.bf16.mxu1 %vm461_vm2, %v420_v61  ;;  %3339 = vmatmul.mubr.msk.bf16.gmra.mrb[16].mxu0 %vm461_vm2, %v1308_v3  ;;  %v1340_v61 = vshll.u32 %v3965_v37, 16  ;;  %v439_v3 = vor.u32 %v437_v25, %v435_v24  ;;  %v457_v24 = vshll.u32 %v3645_v57, 16  ;;  %v1723_v25 = vshll.u32 %v3985_v5, 16 }
  0x3f   : > { %3342 = vmatprep.mubr.msk.bf16.mxu0 %vm461_vm2, %v1315_v9  ;;  %v1335_v9 = vrot.slane %v1333_v34, 1  ;;  %v1721_v4 = vor.u32 %v1720_v54, %v1716_v31  ;;  %v4029_v54 = vld [vmem:[%s3751_s27 + $0x34] sm:$0xff]  }
  0x40   : > { %v1342_v21 = vrot.slane %v1340_v61, 1  ;;  %v444_v28 = vsel %vm328_vm1, %v439_v3, %v443_v56  ;;  %v459_v56 = vrot.slane %v457_v24, 1  ;;  %v1725_v57 = vrot.slane %v1723_v25, 1  ;;  %v4016_v24 = vld [vmem:[%s3751_s27 + $0x2c] sm:$0xff]   ;;  %v1629_v25 = vld [vmem:[%s3751_s27 + $0x4] sm:$0xe] }
  0x41   : > { %v1339_v20 = vor.u32 %v1337_v60, %v1335_v9  ;;  %v1336_v34 = vsel %vm328_vm1, %v1332_v17, %v1335_v9  ;;  %v1727_v60 = vshrl.u32 %v3985_v5, 16  ;;  %v2936_v31 = vcombine.low %v1629_v25, %v3970_v44  ;;  %v4075_v25 = vld [vmem:[%s3751_s27 + $0x74] sm:$0xff]  }
  0x42   : > { %v2124_v16 = vrot.slane %v4075_v25, 1 }
  0x43   : > { %v1343_v29 = vsel %vm328_vm1, %v1339_v20, %v1342_v21  ;;  %v1729_v17 = vor.u32 %v1727_v60, %v1725_v57  ;;  %v1755_v60 = vshll.u32 %v4016_v24, 16 }
  0x45   : > { %3241 = vmatmul.mubr.msk.bf16.gmra.mrb[20].mxu1 %vm461_vm2, %v428_v43  ;;  %v3649_v43 = vld [vmem:[%s3751_s27 + $0x14] sm:$0xff]  }
  0x46   : > { %3244 = vmatprep.mubr.msk.bf16.mxu1 %vm461_vm2, %v436_v49  ;;  %3343 = vmatmul.mubr.msk.bf16.gmra.mrb[20].mxu0 %vm461_vm2, %v1322_v55  ;;  %v1344_v49 = vshrl.u32 %v3965_v37, 16  ;;  %v455_v55 = vor.u32 %v453_v32, %v451_v14  ;;  %v1731_v61 = vshll.u32 %v3649_v43, 16  ;;  %v1735_v11 = vshrl.u32 %v3649_v43, 16 }
  0x47   : > { %3346 = vmatprep.mubr.msk.bf16.mxu0 %vm461_vm2, %v1329_v58  ;;  %v4000_v58 = vld [vmem:[%s3751_s27 + $0x1c] sm:$0xff]   ;;  %v1726_v32 = vsel %vm328_vm1, %v1721_v4, %v1725_v57  ;;  %v2108_v4 = vrot.slane %v4029_v54, 1 }
  0x48   : > { %v1346_v3 = vor.u32 %v1344_v49, %v1342_v21  ;;  %v460_v9 = vsel %vm328_vm1, %v455_v55, %v459_v56  ;;  %v1739_v14 = vshll.u32 %v4000_v58, 16  ;;  %v1733_v20 = vrot.slane %v1731_v61, 1  ;;  %v4039_v55 = vld [vmem:[%s3751_s27 + $0x3c] sm:$0xff]   ;;  %v4044_v61 = vld [vmem:[%s3751_s27 + $0x44] sm:$0xff]  }
  0x49   : > { %v1036_v21 = vsel %vm510_vm0, %v3791_v35, 0  ;;  %v2179_v49 = vsel %vm510_vm0, %v3810_v46, 0  ;;  %v2102_v46 = vrot.slane %v4000_v58, 1  ;;  %v2097_v56 = vrot.slane %v2936_v31, 1 }
  0x4a   : > { %v1351_v26 = vsel %vm328_vm1, %v1346_v3, %v1350_v62  ;;  %v1737_v53 = vor.u32 %v1735_v11, %v1733_v20  ;;  %v1734_v35 = vsel %vm328_vm1, %v1729_v17, %v1733_v20  ;;  %v4047_v3 = vld [vmem:[%s3751_s27 + $0x4c] sm:$0xff]   ;;  %v2106_v62 = vrot.slane %v4016_v24, 1  ;;  %v4056_v11 = vld [vmem:[%s3751_s27 + $0x54] sm:$0xff]   ;;  %v4062_v17 = vld [vmem:[%s3751_s27 + $0x64] sm:$0xff]  }
  0x4b   : > { %v2112_v31 = vrot.slane %v4044_v61, 1  ;;  %v2116_v37 = vrot.slane %v4056_v11, 1  ;;  %v2120_v52 = vrot.slane %v4062_v17, 1 }
  0x4d   : > { %3245 = vmatmul.mubr.msk.bf16.gmra.mrb[24].mxu1 %vm461_vm2, %v444_v28  ;;  %v4009_v28 = vld [vmem:[%s3751_s27 + $0x24] sm:$0xff]  }
  0x4e   : > { %3248 = vmatprep.mubr.msk.bf16.mxu1 %vm461_vm2, %v452_v42  ;;  %3347 = vmatmul.mubr.msk.bf16.gmra.mrb[24].mxu0 %vm461_vm2, %v1336_v34  ;;  %v2098_v42 = vrot.slane %v3985_v5, 1  ;;  %v2100_v34 = vrot.slane %v3649_v43, 1  ;;  %v1743_v5 = vshrl.u32 %v4000_v58, 16  ;;  %v1747_v44 = vshll.u32 %v4009_v28, 16 }
  0x4f   : > { %3350 = vmatprep.mubr.msk.bf16.mxu0 %vm461_vm2, %v1343_v29  ;;  %v1741_v29 = vrot.slane %v1739_v14, 1  ;;  %v1751_v43 = vshrl.u32 %v4009_v28, 16  ;;  %v2104_v57 = vrot.slane %v4009_v28, 1  ;;  %v4059_v14 = vld [vmem:[%s3751_s27 + $0x5c] sm:$0xff]   ;;  %v2110_v28 = vrot.slane %v4039_v55, 1 }
  0x50   : > { %v4050_v58 = vsel %vm2096_vm3, %v2100_v34, %v2102_v46  ;;  %v4065_v20 = vsel %vm2096_vm3, %v2097_v56, %v2098_v42  ;;  %v4086_v56 = vld [vmem:[%s3751_s27 + $0x7c] sm:$0xff]   ;;  %v2118_v15 = vrot.slane %v4059_v14, 1  ;;  %v1749_v50 = vrot.slane %v1747_v44, 1 }
  0x55   : > { %3249 = vmatmul.mubr.msk.bf16.gmra.mrb[28].mxu1 %vm461_vm2, %v460_v9  ;;  %v1742_v9 = vsel %vm328_vm1, %v1737_v53, %v1741_v29  ;;  %v4081_v53 = vsel %vm2096_vm3, %v2106_v62, %v2108_v4 }
  0x56   : > { %3254 = vmatprep.mubr.msk.bf16.mxu1 %vm461_vm2, %v3754_v6  ;;  %3351 = vmatmul.mubr.msk.bf16.gmra.mrb[28].mxu0 %vm461_vm2, %v1351_v26  ;;  %v4032_v6 = vsel %vm2096_vm3, %v2098_v42, %v2100_v34  ;;  %v4068_v26 = vsel %vm2096_vm3, %v2102_v46, %v2104_v57  ;;  %v4078_v34 = vsel %vm2096_vm3, %v2104_v57, %v2106_v62  ;;  %v2114_v42 = vrot.slane %v4047_v3, 1  ;;  %v4097_v57 = vld [vmem:[%s3751_s27 + $0x84] ss:$0 sps:$4 sm:$0x11]  }
  0x57   : > { %3356 = vmatprep.mubr.msk.bf16.mxu0 %vm461_vm2, %v1726_v32  ;;  %v4072_v32 = vld [vmem:[%s3751_s27 + $0x6c] sm:$0xff]   ;;  %v4089_v46 = vsel %vm2096_vm3, %v2108_v4, %v2110_v28  ;;  %v4100_v62 = vsel %vm2096_vm3, %v2110_v28, %v2112_v31  ;;  %v4116_v28 = vsel %vm2096_vm3, %v2118_v15, %v2120_v52 }
  0x58   : > { %v4103_v38 = vsel %vm2096_vm3, %v2112_v31, %v2114_v42  ;;  %v2122_v4 = vrot.slane %v4072_v32, 1  ;;  %v4110_v2 = vsel %vm2096_vm3, %v2114_v42, %v2116_v37  ;;  %4359 = vst [vmem:[#allocation10_spill] sm:$0xff] %v4116_v28  ;;  %v2126_v31 = vrot.slane %v4086_v56, 1 }
  0x59   : > { %4358 = vst [vmem:[#allocation9_spill] sm:$0xff] %v4103_v38  ;;  %v1753_v42 = vor.u32 %v1751_v43, %v1749_v50  ;;  %v1757_v28 = vrot.slane %v1755_v60, 1  ;;  %v1779_v60 = vshll.u32 %v4044_v61, 16 }
  0x5a   : > { %v4121_v38 = vsel %vm2096_vm3, %v2120_v52, %v2122_v4  ;;  %v1763_v52 = vshll.u32 %v4029_v54, 16 }
  0x5d   : > { %3255 = vmatmul.mubr.msk.bf16.vlgmr.msra.gmra.mrb[0].mxu1 %vm461_vm2, %v3757_v7  ;;  %v4113_v7 = vsel %vm2096_vm3, %v2116_v37, %v2118_v15  ;;  %v1745_v37 = vor.u32 %v1743_v5, %v1741_v29  ;;  %v4129_v15 = vsel %vm2096_vm3, %v2124_v16, %v2126_v31  ;;  %v1767_v29 = vshrl.u32 %v4029_v54, 16 }
  0x5e   : > { %3287 = vmatpush3.bf16.msra.mxu1 %v1036_v21  ;;  %3258 = vmatprep.mubr.msk.bf16.mxu1 %vm461_vm2, %v3772_v18  ;;  %v4124_v21 = vsel %vm2096_vm3, %v2122_v4, %v2124_v16  ;;  %v2128_v18 = vrot.slane %v4097_v57, 1  ;;  %v1759_v4 = vshrl.u32 %v4016_v24, 16  ;;  %v1771_v16 = vshll.u32 %v4039_v55, 16 }
  0x5f   : > { %3357 = vmatmul.mubr.msk.bf16.vlgmr.msra.gmra.mrb[0].mxu0 %vm461_vm2, %v1734_v35  ;;  %v1750_v44 = vsel %vm328_vm1, %v1745_v37, %v1749_v50  ;;  %v1765_v5 = vrot.slane %v1763_v52, 1  ;;  %v1791_v52 = vshrl.u32 %v4047_v3, 16 }
  0x60   : > { %3389 = vmatpush3.bf16.msra.mxu0 %v2179_v49  ;;  %3360 = vmatprep.mubr.msk.bf16.mxu0 %vm461_vm2, %v1742_v9  ;;  %v4132_v35 = vsel %vm2096_vm3, %v2126_v31, %v2128_v18  ;;  %v1758_v49 = vsel %vm328_vm1, %v1753_v42, %v1757_v28  ;;  %v1761_v50 = vor.u32 %v1759_v4, %v1757_v28  ;;  %v1773_v24 = vrot.slane %v1771_v16, 1 }
  0x61   : > { %v1769_v43 = vor.u32 %v1767_v29, %v1765_v5  ;;  %v1775_v9 = vshrl.u32 %v4039_v55, 16  ;;  %v1787_v31 = vshll.u32 %v4047_v3, 16  ;;  %v1781_v28 = vrot.slane %v1779_v60, 1 }
  0x62   : > { %v1795_v42 = vshll.u32 %v4056_v11, 16  ;;  %v1811_v16 = vshll.u32 %v4062_v17, 16 }
  0x63   : > { %v1774_v54 = vsel %vm328_vm1, %v1769_v43, %v1773_v24  ;;  %v1777_v18 = vor.u32 %v1775_v9, %v1773_v24  ;;  %v1789_v55 = vrot.slane %v1787_v31, 1  ;;  %v1823_v9 = vshrl.u32 %v4072_v32, 16 }
  0x64   : > { %v1797_v4 = vrot.slane %v1795_v42, 1  ;;  %v1813_v43 = vrot.slane %v1811_v16, 1 }
  0x65   : > { %3259 = vmatmul.mubr.msk.bf16.gmra.mrb[4].mxu1 %vm461_vm2, %v3784_v30  ;;  %v1766_v30 = vsel %vm328_vm1, %v1761_v50, %v1765_v5  ;;  %v1807_v5 = vshrl.u32 %v4059_v14, 16  ;;  %v1819_v50 = vshll.u32 %v4072_v32, 16 }
  0x66   : > { %3262 = vmatprep.mubr.msk.bf16.mxu1 %vm461_vm2, %v3800_v41  ;;  %v1783_v41 = vshrl.u32 %v4044_v61, 16 }
  0x67   : > { %3361 = vmatmul.mubr.msk.bf16.gmra.mrb[4].mxu0 %vm461_vm2, %v1750_v44  ;;  %v1803_v44 = vshll.u32 %v4059_v14, 16  ;;  %v1821_v14 = vrot.slane %v1819_v50, 1 }
  0x68   : > { %3364 = vmatprep.mubr.msk.bf16.mxu0 %vm461_vm2, %v1758_v49  ;;  %v1785_v37 = vor.u32 %v1783_v41, %v1781_v28  ;;  %v1793_v49 = vor.u32 %v1791_v52, %v1789_v55 }
  0x69   : > { %v1805_v3 = vrot.slane %v1803_v44, 1  ;;  %v1825_v31 = vor.u32 %v1823_v9, %v1821_v14 }
  0x6a   : > { %v1790_v61 = vsel %vm328_vm1, %v1785_v37, %v1789_v55  ;;  %v1843_v37 = vshll.u32 %v4097_v57, 16 }
  0x6b   : > { %v1809_v24 = vor.u32 %v1807_v5, %v1805_v3 }
  0x6c   : > { %v1845_v55 = vrot.slane %v1843_v37, 1 }
  0x6d   : > { %3263 = vmatmul.mubr.msk.bf16.gmra.mrb[8].mxu1 %vm461_vm2, %v3816_v51  ;;  %v1782_v51 = vsel %vm328_vm1, %v1777_v18, %v1781_v28 }
  0x6e   : > { %3266 = vmatprep.mubr.msk.bf16.mxu1 %vm461_vm2, %v3835_v1  ;;  %v1799_v1 = vshrl.u32 %v4056_v11, 16 }
  0x6f   : > { %3365 = vmatmul.mubr.msk.bf16.gmra.mrb[8].mxu0 %vm461_vm2, %v1766_v30  ;;  %v1827_v30 = vshll.u32 %v4075_v25, 16 }
  0x70   : > { %3368 = vmatprep.mubr.msk.bf16.mxu0 %vm461_vm2, %v1774_v54  ;;  %v1801_v29 = vor.u32 %v1799_v1, %v1797_v4  ;;  %v1835_v54 = vshll.u32 %v4086_v56, 16 }
  0x71   : > { %v1829_v41 = vrot.slane %v1827_v30, 1 }
  0x72   : > { %v1806_v11 = vsel %vm328_vm1, %v1801_v29, %v1805_v3  ;;  %v1837_v32 = vrot.slane %v1835_v54, 1 }
  0x73   : > { %v1830_v18 = vsel %vm328_vm1, %v1825_v31, %v1829_v41 }
  0x75   : > { %3267 = vmatmul.mubr.msk.bf16.gmra.mrb[12].mxu1 %vm461_vm2, %v3853_v22  ;;  %v1798_v22 = vsel %vm328_vm1, %v1793_v49, %v1797_v4 }
  0x76   : > { %3270 = vmatprep.mubr.msk.bf16.mxu1 %vm461_vm2, %v3865_v33  ;;  %v1815_v33 = vshrl.u32 %v4062_v17, 16 }
  0x77   : > { %3369 = vmatmul.mubr.msk.bf16.gmra.mrb[12].mxu0 %vm461_vm2, %v1782_v51 }
  0x78   : > { %3372 = vmatprep.mubr.msk.bf16.mxu0 %vm461_vm2, %v1790_v61  ;;  %v1817_v60 = vor.u32 %v1815_v33, %v1813_v43 }
  0x7a   : > { %v1822_v17 = vsel %vm328_vm1, %v1817_v60, %v1821_v14 }
  0x7d   : > { %3271 = vmatmul.mubr.msk.bf16.gmra.mrb[16].mxu1 %vm461_vm2, %v3875_v47  ;;  %v1814_v47 = vsel %vm328_vm1, %v1809_v24, %v1813_v43 }
  0x7e   : > { %3274 = vmatprep.mubr.msk.bf16.mxu1 %vm461_vm2, %v3889_v59  ;;  %v1831_v59 = vshrl.u32 %v4075_v25, 16 }
  0x7f   : > { %3373 = vmatmul.mubr.msk.bf16.gmra.mrb[16].mxu0 %vm461_vm2, %v1798_v22 }
  0x80   : > { %3376 = vmatprep.mubr.msk.bf16.mxu0 %vm461_vm2, %v1806_v11  ;;  %v1833_v28 = vor.u32 %v1831_v59, %v1829_v41 }
  0x82   : > { %v1838_v25 = vsel %vm328_vm1, %v1833_v28, %v1837_v32 }
  0x85   : > { %3275 = vmatmul.mubr.msk.bf16.gmra.mrb[20].mxu1 %vm461_vm2, %v3901_v8  ;;  %v1839_v8 = vshrl.u32 %v4086_v56, 16 }
  0x86   : > { %3278 = vmatprep.mubr.msk.bf16.mxu1 %vm461_vm2, %v3921_v36 }
  0x87   : > { %3377 = vmatmul.mubr.msk.bf16.gmra.mrb[20].mxu0 %vm461_vm2, %v1814_v47  ;;  %v1841_v36 = vor.u32 %v1839_v8, %v1837_v32 }
  0x88   : > { %3380 = vmatprep.mubr.msk.bf16.mxu0 %vm461_vm2, %v1822_v17 }
  0x89   : > { %v1846_v42 = vsel %vm328_vm1, %v1841_v36, %v1845_v55 }
  0x8d   : > { %3279 = vmatmul.mubr.msk.bf16.gmra.mrb[24].mxu1 %vm461_vm2, %v3929_v48 }
  0x8e   : > { %3282 = vmatprep.mubr.msk.bf16.mxu1 %vm461_vm2, %v3943_v0  ;;  %v4275_v0 = vld [vmem:[%s4342_s2] ss:$0 sm:$0xff] }
  0x8f   : > { %3381 = vmatmul.mubr.msk.bf16.gmra.mrb[24].mxu0 %vm461_vm2, %v1830_v18 }
  0x90   : > { %3384 = vmatprep.mubr.msk.bf16.mxu0 %vm461_vm2, %v1838_v25 }
  0x95   : > { %3283 = vmatmul.mubr.msk.bf16.gmra.mrb[28].mxu1 %vm461_vm2, %v3959_v27 }
  0x96   : > { %3288 = vmatprep.mubr.msk.bf16.mxu1 %vm461_vm2, %v3764_v12  ;;  %v4360_v12 = vld [vmem:[#allocation9_spill] sm:$0xff] }
  0x97   : > { %3385 = vmatmul.mubr.msk.bf16.gmra.mrb[28].mxu0 %vm461_vm2, %v1846_v42 }
  0x98   : > { %3390 = vmatprep.mubr.msk.bf16.mxu0 %vm461_vm2, %v4065_v20 }
  0x9d   : > { %3289 = vmatmul.mubr.msk.bf16.vlgmr.msra.gmra.mrb[0].mxu1 %vm461_vm2, %v3767_v13  ;;  %v4361_v13 = vld [vmem:[#allocation2_spill] sm:$0xff] }
  0x9e   : > { %3292 = vmatprep.mubr.msk.bf16.mxu1 %vm461_vm2, %v3775_v19  ;;  %v4362_v19 = vld [vmem:[#allocation3_spill] sm:$0xff] }
  0x9f   : > { %3391 = vmatmul.mubr.msk.bf16.vlgmr.msra.gmra.mrb[0].mxu0 %vm461_vm2, %v4032_v6 }
  0xa0   : > { %3394 = vmatprep.mubr.msk.bf16.mxu0 %vm461_vm2, %v4050_v58 }
  0xa5   : > { %3293 = vmatmul.mubr.msk.bf16.gmra.mrb[4].mxu1 %vm461_vm2, %v3796_v39  ;;  %v4363_v39 = vld [vmem:[#allocation4_spill] sm:$0xff] }
  0xa6   : > { %3296 = vmatprep.mubr.msk.bf16.mxu1 %vm461_vm2, %v3805_v45  ;;  %v4364_v45 = vld [vmem:[#allocation5_spill] sm:$0xff] }
  0xa7   : > { %3395 = vmatmul.mubr.msk.bf16.gmra.mrb[4].mxu0 %vm461_vm2, %v4068_v26 }
  0xa8   : > { %3398 = vmatprep.mubr.msk.bf16.mxu0 %vm461_vm2, %v4078_v34 }
  0xad   : > { %3297 = vmatmul.mubr.msk.bf16.gmra.mrb[8].mxu1 %vm461_vm2, %v3831_v63  ;;  %v4365_v63 = vld [vmem:[#allocation10_spill] sm:$0xff] }
  0xae   : > { %3300 = vmatprep.mubr.msk.bf16.mxu1 %vm461_vm2, %v3843_v10  ;;  %v4366_v10 = vld [vmem:[#allocation6_spill] sm:$0xff] }
  0xaf   : > { %3399 = vmatmul.mubr.msk.bf16.gmra.mrb[8].mxu0 %vm461_vm2, %v4081_v53 }
  0xb0   : > { %3402 = vmatprep.mubr.msk.bf16.mxu0 %vm461_vm2, %v4089_v46 }
  0xb5   : > { %3301 = vmatmul.mubr.msk.bf16.gmra.mrb[12].mxu1 %vm461_vm2, %v3856_v23  ;;  %v4367_v23 = vld [vmem:[#allocation7_spill] sm:$0xff] }
  0xb6   : > { %3304 = vmatprep.mubr.msk.bf16.mxu1 %vm461_vm2, %v3871_v40  ;;  %v4368_v40 = vld [vmem:[#allocation8_spill] sm:$0xff] }
  0xb7   : > { %3403 = vmatmul.mubr.msk.bf16.gmra.mrb[12].mxu0 %vm461_vm2, %v4100_v62 }
  0xb8   : > { %3406 = vmatprep.mubr.msk.bf16.mxu0 %vm461_vm2, %v4360_v12 }
  0xbd   : > { %3305 = vmatmul.mubr.msk.bf16.gmra.mrb[16].mxu1 %vm461_vm2, %v4361_v13 }
  0xbe   : > { %3308 = vmatprep.mubr.msk.bf16.mxu1 %vm461_vm2, %v4362_v19 }
  0xbf   : > { %3407 = vmatmul.mubr.msk.bf16.gmra.mrb[16].mxu0 %vm461_vm2, %v4110_v2 }
  0xc0   : > { %3410 = vmatprep.mubr.msk.bf16.mxu0 %vm461_vm2, %v4113_v7 }
  0xc5   : > { %3309 = vmatmul.mubr.msk.bf16.gmra.mrb[20].mxu1 %vm461_vm2, %v4363_v39 }
  0xc6   : > { %3312 = vmatprep.mubr.msk.bf16.mxu1 %vm461_vm2, %v4364_v45 }
  0xc7   : > { %3411 = vmatmul.mubr.msk.bf16.gmra.mrb[20].mxu0 %vm461_vm2, %v4365_v63 }
  0xc8   : > { %3414 = vmatprep.mubr.msk.bf16.mxu0 %vm461_vm2, %v4121_v38 }
  0xcd   : > { %3313 = vmatmul.mubr.msk.bf16.gmra.mrb[24].mxu1 %vm461_vm2, %v4366_v10 }
  0xce   : > { %3316 = vmatprep.mubr.msk.bf16.mxu1 %vm461_vm2, %v4367_v23 }
  0xcf   : > { %3415 = vmatmul.mubr.msk.bf16.gmra.mrb[24].mxu0 %vm461_vm2, %v4124_v21 }
  0xd0   : > { %3418 = vmatprep.mubr.msk.bf16.mxu0 %vm461_vm2, %v4129_v15 }
  0xd5   : > { %3317 = vmatmul.mubr.msk.bf16.gmra.mrb[28].mxu1 %vm461_vm2, %v4368_v40 }
  0xd7   : > { %3419 = vmatmul.mubr.msk.bf16.gmra.mrb[28].mxu0 %vm461_vm2, %v4132_v35 }
 0x170   : > { %v3290_v2 = vpop.f32.mrb[0].mxu1 }
 0x171   : > { %v1072_v38 = vpop.f32.mrb[1].mxu1 }
 0x172   : > { %v3392_v48 = vpop.f32.mrb[0].mxu0  ;;  %v3291_v27 = vpop.f32.mrb[2].mxu1 }
 0x173   : > { %v3422_v6 = vadd.f32 %v3392_v48, %v3290_v2  ;;  %v2215_v58 = vpop.f32.mrb[1].mxu0  ;;  %v1075_v20 = vpop.f32.mrb[3].mxu1 }
 0x174   : > { %v3423_v26 = vadd.f32 %v2215_v58, %v1072_v38  ;;  %v3393_v34 = vpop.f32.mrb[2].mxu0 }
 0x175   : > { %v2383_v53 = vadd.f32 %v3422_v6, %v4275_v0  ;;  %v3424_v56 = vadd.f32 %v3393_v34, %v3291_v27  ;;  %v2218_v46 = vpop.f32.mrb[3].mxu0 }
 0x176   : > { %v2381_v57 = vadd.f32 %v3423_v26, %v4275_v0  ;;  %v3425_v62 = vadd.f32 %v2218_v46, %v1075_v20 }
 0x177   : > { %v2447_v7 = vmul.f32 0.01, %v2383_v53  ;;  %v2384_v21 = vadd.f32 %v3424_v56, %v4275_v0  ;;  %vm2415_vm4 = vcmp.ge.f32.partialorder %v2383_v53, 0.0 }
 0x178   : > { %v2445_v15 = vmul.f32 0.01, %v2381_v57  ;;  %v2382_v35 = vadd.f32 %v3425_v62, %v4275_v0  ;;  %v3294_v51 = vpop.f32.mrb[4].mxu1  ;;  %vm2413_vm5 = vcmp.ge.f32.partialorder %v2381_v57, 0.0 }
 0x179   : > { %vm2416_vm6 = vcmp.ge.f32.partialorder %v2384_v21, 0.0  ;;  %v2448_v52 = vmul.f32 0.01, %v2384_v21  ;;  %v1088_v61 = vpop.f32.mrb[5].mxu1  ;;  %v2479_v49 = vsel %vm2415_vm4, %v2383_v53, %v2447_v7 }
 0x17a   : > { %vm2414_vm7 = vcmp.ge.f32.partialorder %v2382_v35, 0.0  ;;  %v2446_v1 = vmul.f32 0.01, %v2382_v35  ;;  %v3396_v44 = vpop.f32.mrb[4].mxu0  ;;  %v3295_v4 = vpop.f32.mrb[6].mxu1  ;;  %v2477_v5 = vsel %vm2413_vm5, %v2381_v57, %v2445_v15 }
 0x17b   : > { %v2480_v29 = vsel %vm2416_vm6, %v2384_v21, %v2448_v52  ;;  %v3426_v3 = vadd.f32 %v3396_v44, %v3294_v51  ;;  %v2231_v16 = vpop.f32.mrb[5].mxu0  ;;  %v1091_v22 = vpop.f32.mrb[7].mxu1 }
 0x17c   : > { %v3029_v11 = vpack.c.bf16 %v2480_v29, %v2479_v49  ;;  %v2478_v33 = vsel %vm2414_vm7, %v2382_v35, %v2446_v1  ;;  %v3427_v50 = vadd.f32 %v2231_v16, %v1088_v61  ;;  %v3397_v43 = vpop.f32.mrb[6].mxu0 }
 0x17d   : > { %v3024_v24 = vpack.c.bf16 %v2478_v33, %v2477_v5  ;;  %v2387_v60 = vadd.f32 %v3426_v3, %v4275_v0  ;;  %v3428_v14 = vadd.f32 %v3397_v43, %v3295_v4  ;;  %v2234_v30 = vpop.f32.mrb[7].mxu0 }
 0x17e   : > { %3101 = vst [vmem:[%s4285_s10 + $0x8] sm:$0xff] %v3029_v11   ;;  %v2385_v47 = vadd.f32 %v3427_v50, %v4275_v0  ;;  %v3429_v9 = vadd.f32 %v2234_v30, %v1091_v22 }
 0x17f   : > { %3025 = vst [vmem:[%s4285_s10] sm:$0xff] %v3024_v24   ;;  %v2451_v17 = vmul.f32 0.01, %v2387_v60  ;;  %v2388_v59 = vadd.f32 %v3428_v14, %v4275_v0  ;;  %vm2419_vm8 = vcmp.ge.f32.partialorder %v2387_v60, 0.0 }
 0x180   : > { %v2449_v54 = vmul.f32 0.01, %v2385_v47  ;;  %v2386_v41 = vadd.f32 %v3429_v9, %v4275_v0  ;;  %v3298_v31 = vpop.f32.mrb[8].mxu1  ;;  %vm2417_vm9 = vcmp.ge.f32.partialorder %v2385_v47, 0.0 }
 0x181   : > { %vm2420_vm10 = vcmp.ge.f32.partialorder %v2388_v59, 0.0  ;;  %v2452_v28 = vmul.f32 0.01, %v2388_v59  ;;  %v1104_v32 = vpop.f32.mrb[9].mxu1  ;;  %v2483_v25 = vsel %vm2419_vm8, %v2387_v60, %v2451_v17 }
 0x182   : > { %vm2418_vm11 = vcmp.ge.f32.partialorder %v2386_v41, 0.0  ;;  %v2450_v18 = vmul.f32 0.01, %v2386_v41  ;;  %v3400_v8 = vpop.f32.mrb[8].mxu0  ;;  %v3299_v37 = vpop.f32.mrb[10].mxu1  ;;  %v2481_v13 = vsel %vm2417_vm9, %v2385_v47, %v2449_v54 }
 0x183   : > { %v2484_v36 = vsel %vm2420_vm10, %v2388_v59, %v2452_v28  ;;  %v3430_v55 = vadd.f32 %v3400_v8, %v3298_v31  ;;  %v2247_v42 = vpop.f32.mrb[9].mxu0  ;;  %v1107_v12 = vpop.f32.mrb[11].mxu1 }
 0x184   : > { %v3039_v19 = vpack.c.bf16 %v2484_v36, %v2483_v25  ;;  %v2482_v39 = vsel %vm2418_vm11, %v2386_v41, %v2450_v18  ;;  %v3431_v45 = vadd.f32 %v2247_v42, %v1104_v32  ;;  %v3401_v63 = vpop.f32.mrb[10].mxu0 }
 0x185   : > { %v3034_v10 = vpack.c.bf16 %v2482_v39, %v2481_v13  ;;  %v2391_v23 = vadd.f32 %v3430_v55, %v4275_v0  ;;  %v3432_v40 = vadd.f32 %v3401_v63, %v3299_v37  ;;  %v2250_v2 = vpop.f32.mrb[11].mxu0 }
 0x186   : > { %3103 = vst [vmem:[%s4285_s10 + $0x18] sm:$0xff] %v3039_v19   ;;  %v2389_v38 = vadd.f32 %v3431_v45, %v4275_v0  ;;  %v3433_v48 = vadd.f32 %v2250_v2, %v1107_v12 }
 0x187   : > { %3102 = vst [vmem:[%s4285_s10 + $0x10] sm:$0xff] %v3034_v10   ;;  %v2455_v27 = vmul.f32 0.01, %v2391_v23  ;;  %v2392_v6 = vadd.f32 %v3432_v40, %v4275_v0  ;;  %vm2423_vm12 = vcmp.ge.f32.partialorder %v2391_v23, 0.0 }
 0x188   : > { %v2453_v58 = vmul.f32 0.01, %v2389_v38  ;;  %v2390_v20 = vadd.f32 %v3433_v48, %v4275_v0  ;;  %v3302_v26 = vpop.f32.mrb[12].mxu1  ;;  %vm2421_vm13 = vcmp.ge.f32.partialorder %v2389_v38, 0.0 }
 0x189   : > { %vm2424_vm14 = vcmp.ge.f32.partialorder %v2392_v6, 0.0  ;;  %v2456_v34 = vmul.f32 0.01, %v2392_v6  ;;  %v1120_v53 = vpop.f32.mrb[13].mxu1  ;;  %v2487_v62 = vsel %vm2423_vm12, %v2391_v23, %v2455_v27 }
 0x18a   : > { %vm2422_vm15 = vcmp.ge.f32.partialorder %v2390_v20, 0.0  ;;  %v2454_v56 = vmul.f32 0.01, %v2390_v20  ;;  %v3404_v46 = vpop.f32.mrb[12].mxu0  ;;  %v3303_v57 = vpop.f32.mrb[14].mxu1  ;;  %v2485_v51 = vsel %vm2421_vm13, %v2389_v38, %v2453_v58 }
 0x18b   : > { %v2488_v7 = vsel %vm2424_vm14, %v2392_v6, %v2456_v34  ;;  %v3434_v21 = vadd.f32 %v3404_v46, %v3302_v26  ;;  %v2263_v15 = vpop.f32.mrb[13].mxu0  ;;  %v1123_v35 = vpop.f32.mrb[15].mxu1 }
 0x18c   : > { %v3049_v52 = vpack.c.bf16 %v2488_v7, %v2487_v62  ;;  %v2486_v61 = vsel %vm2422_vm15, %v2390_v20, %v2454_v56  ;;  %v3435_v1 = vadd.f32 %v2263_v15, %v1120_v53  ;;  %v3405_v44 = vpop.f32.mrb[14].mxu0 }
 0x18d   : > { %v3044_v4 = vpack.c.bf16 %v2486_v61, %v2485_v51  ;;  %v2395_v49 = vadd.f32 %v3434_v21, %v4275_v0  ;;  %v3436_v29 = vadd.f32 %v3405_v44, %v3303_v57  ;;  %v2266_v3 = vpop.f32.mrb[15].mxu0 }
 0x18e   : > { %3105 = vst [vmem:[%s4285_s10 + $0x28] sm:$0xff] %v3049_v52   ;;  %v2393_v16 = vadd.f32 %v3435_v1, %v4275_v0  ;;  %v3437_v22 = vadd.f32 %v2266_v3, %v1123_v35 }
 0x18f   : > { %3104 = vst [vmem:[%s4285_s10 + $0x20] sm:$0xff] %v3044_v4   ;;  %v2459_v5 = vmul.f32 0.01, %v2395_v49  ;;  %v2396_v11 = vadd.f32 %v3436_v29, %v4275_v0  ;;  %vm2427_vm0 = vcmp.ge.f32.partialorder %v2395_v49, 0.0 }
 0x190   : > { %v2457_v33 = vmul.f32 0.01, %v2393_v16  ;;  %v2394_v50 = vadd.f32 %v3437_v22, %v4275_v0  ;;  %v3306_v43 = vpop.f32.mrb[16].mxu1  ;;  %vm2425_vm1 = vcmp.ge.f32.partialorder %v2393_v16, 0.0 }
 0x191   : > { %vm2428_vm2 = vcmp.ge.f32.partialorder %v2396_v11, 0.0  ;;  %v2460_v24 = vmul.f32 0.01, %v2396_v11  ;;  %v1136_v60 = vpop.f32.mrb[17].mxu1  ;;  %v2491_v9 = vsel %vm2427_vm0, %v2395_v49, %v2459_v5 }
 0x192   : > { %vm2426_vm3 = vcmp.ge.f32.partialorder %v2394_v50, 0.0  ;;  %v2458_v14 = vmul.f32 0.01, %v2394_v50  ;;  %v3408_v30 = vpop.f32.mrb[16].mxu0  ;;  %v3307_v47 = vpop.f32.mrb[18].mxu1  ;;  %v2489_v31 = vsel %vm2425_vm1, %v2393_v16, %v2457_v33 }
 0x193   : > { %v2492_v17 = vsel %vm2428_vm2, %v2396_v11, %v2460_v24  ;;  %v3438_v59 = vadd.f32 %v3408_v30, %v3306_v43  ;;  %v2279_v54 = vpop.f32.mrb[17].mxu0  ;;  %v1139_v41 = vpop.f32.mrb[19].mxu1 }
 0x194   : > { %v3059_v28 = vpack.c.bf16 %v2492_v17, %v2491_v9  ;;  %v2490_v32 = vsel %vm2426_vm3, %v2394_v50, %v2458_v14  ;;  %v3439_v18 = vadd.f32 %v2279_v54, %v1136_v60  ;;  %v3409_v8 = vpop.f32.mrb[18].mxu0 }
 0x195   : > { %v3054_v37 = vpack.c.bf16 %v2490_v32, %v2489_v31  ;;  %v2399_v25 = vadd.f32 %v3438_v59, %v4275_v0  ;;  %v3440_v36 = vadd.f32 %v3409_v8, %v3307_v47  ;;  %v2282_v55 = vpop.f32.mrb[19].mxu0 }
 0x196   : > { %3107 = vst [vmem:[%s4285_s10 + $0x38] sm:$0xff] %v3059_v28   ;;  %v2397_v42 = vadd.f32 %v3439_v18, %v4275_v0  ;;  %v3441_v12 = vadd.f32 %v2282_v55, %v1139_v41 }
 0x197   : > { %3106 = vst [vmem:[%s4285_s10 + $0x30] sm:$0xff] %v3054_v37   ;;  %v2463_v13 = vmul.f32 0.01, %v2399_v25  ;;  %v2400_v19 = vadd.f32 %v3440_v36, %v4275_v0  ;;  %vm2431_vm4 = vcmp.ge.f32.partialorder %v2399_v25, 0.0 }
 0x198   : > { %v2461_v39 = vmul.f32 0.01, %v2397_v42  ;;  %v2398_v45 = vadd.f32 %v3441_v12, %v4275_v0  ;;  %v3310_v63 = vpop.f32.mrb[20].mxu1  ;;  %vm2429_vm5 = vcmp.ge.f32.partialorder %v2397_v42, 0.0 }
 0x199   : > { %vm2432_vm6 = vcmp.ge.f32.partialorder %v2400_v19, 0.0  ;;  %v2464_v10 = vmul.f32 0.01, %v2400_v19  ;;  %v1152_v23 = vpop.f32.mrb[21].mxu1  ;;  %v2495_v48 = vsel %vm2431_vm4, %v2399_v25, %v2463_v13 }
 0x19a   : > { %vm2430_vm7 = vcmp.ge.f32.partialorder %v2398_v45, 0.0  ;;  %v2462_v40 = vmul.f32 0.01, %v2398_v45  ;;  %v3412_v2 = vpop.f32.mrb[20].mxu0  ;;  %v3311_v38 = vpop.f32.mrb[22].mxu1  ;;  %v2493_v26 = vsel %vm2429_vm5, %v2397_v42, %v2461_v39 }
 0x19b   : > { %v2496_v27 = vsel %vm2432_vm6, %v2400_v19, %v2464_v10  ;;  %v3442_v6 = vadd.f32 %v3412_v2, %v3310_v63  ;;  %v2295_v58 = vpop.f32.mrb[21].mxu0  ;;  %v1155_v20 = vpop.f32.mrb[23].mxu1 }
 0x19c   : > { %v3069_v34 = vpack.c.bf16 %v2496_v27, %v2495_v48  ;;  %v2494_v53 = vsel %vm2430_vm7, %v2398_v45, %v2462_v40  ;;  %v3443_v56 = vadd.f32 %v2295_v58, %v1152_v23  ;;  %v3413_v46 = vpop.f32.mrb[22].mxu0 }
 0x19d   : > { %v3064_v57 = vpack.c.bf16 %v2494_v53, %v2493_v26  ;;  %v2403_v62 = vadd.f32 %v3442_v6, %v4275_v0  ;;  %v3444_v7 = vadd.f32 %v3413_v46, %v3311_v38  ;;  %v2298_v21 = vpop.f32.mrb[23].mxu0 }
 0x19e   : > { %3109 = vst [vmem:[%s4285_s10 + $0x48] sm:$0xff] %v3069_v34   ;;  %v2401_v15 = vadd.f32 %v3443_v56, %v4275_v0  ;;  %v3445_v35 = vadd.f32 %v2298_v21, %v1155_v20 }
 0x19f   : > { %3108 = vst [vmem:[%s4285_s10 + $0x40] sm:$0xff] %v3064_v57   ;;  %v2467_v51 = vmul.f32 0.01, %v2403_v62  ;;  %v2404_v52 = vadd.f32 %v3444_v7, %v4275_v0  ;;  %vm2435_vm8 = vcmp.ge.f32.partialorder %v2403_v62, 0.0 }
 0x1a0   : > { %v2465_v61 = vmul.f32 0.01, %v2401_v15  ;;  %v2402_v1 = vadd.f32 %v3445_v35, %v4275_v0  ;;  %v3314_v44 = vpop.f32.mrb[24].mxu1  ;;  %vm2433_vm9 = vcmp.ge.f32.partialorder %v2401_v15, 0.0 }
 0x1a1   : > { %vm2436_vm10 = vcmp.ge.f32.partialorder %v2404_v52, 0.0  ;;  %v2468_v4 = vmul.f32 0.01, %v2404_v52  ;;  %v1168_v49 = vpop.f32.mrb[25].mxu1  ;;  %v2499_v22 = vsel %vm2435_vm8, %v2403_v62, %v2467_v51 }
 0x1a2   : > { %vm2434_vm11 = vcmp.ge.f32.partialorder %v2402_v1, 0.0  ;;  %v2466_v29 = vmul.f32 0.01, %v2402_v1  ;;  %v3416_v3 = vpop.f32.mrb[24].mxu0  ;;  %v3315_v16 = vpop.f32.mrb[26].mxu1  ;;  %v2497_v43 = vsel %vm2433_vm9, %v2401_v15, %v2465_v61 }
 0x1a3   : > { %v2500_v5 = vsel %vm2436_vm10, %v2404_v52, %v2468_v4  ;;  %v3446_v11 = vadd.f32 %v3416_v3, %v3314_v44  ;;  %v2311_v33 = vpop.f32.mrb[25].mxu0  ;;  %v1171_v50 = vpop.f32.mrb[27].mxu1 }
 0x1a4   : > { %v3079_v24 = vpack.c.bf16 %v2500_v5, %v2499_v22  ;;  %v2498_v60 = vsel %vm2434_vm11, %v2402_v1, %v2466_v29  ;;  %v3447_v14 = vadd.f32 %v2311_v33, %v1168_v49  ;;  %v3417_v30 = vpop.f32.mrb[26].mxu0 }
 0x1a5   : > { %v3074_v47 = vpack.c.bf16 %v2498_v60, %v2497_v43  ;;  %v2407_v9 = vadd.f32 %v3446_v11, %v4275_v0  ;;  %v3448_v17 = vadd.f32 %v3417_v30, %v3315_v16  ;;  %v2314_v59 = vpop.f32.mrb[27].mxu0 }
 0x1a6   : > { %3111 = vst [vmem:[%s4285_s10 + $0x58] sm:$0xff] %v3079_v24   ;;  %v2405_v54 = vadd.f32 %v3447_v14, %v4275_v0  ;;  %v3449_v41 = vadd.f32 %v2314_v59, %v1171_v50 }
 0x1a7   : > { %3110 = vst [vmem:[%s4285_s10 + $0x50] sm:$0xff] %v3074_v47   ;;  %v2471_v31 = vmul.f32 0.01, %v2407_v9  ;;  %v2408_v28 = vadd.f32 %v3448_v17, %v4275_v0  ;;  %vm2439_vm12 = vcmp.ge.f32.partialorder %v2407_v9, 0.0 }
 0x1a8   : > { %v2469_v32 = vmul.f32 0.01, %v2405_v54  ;;  %v2406_v18 = vadd.f32 %v3449_v41, %v4275_v0  ;;  %v3318_v8 = vpop.f32.mrb[28].mxu1  ;;  %vm2437_vm13 = vcmp.ge.f32.partialorder %v2405_v54, 0.0 }
 0x1a9   : > { %vm2440_vm14 = vcmp.ge.f32.partialorder %v2408_v28, 0.0  ;;  %v2472_v37 = vmul.f32 0.01, %v2408_v28  ;;  %v1184_v25 = vpop.f32.mrb[29].mxu1  ;;  %v2503_v12 = vsel %vm2439_vm12, %v2407_v9, %v2471_v31 }
 0x1aa   : > { %vm2438_vm15 = vcmp.ge.f32.partialorder %v2406_v18, 0.0  ;;  %v2470_v36 = vmul.f32 0.01, %v2406_v18  ;;  %v3420_v55 = vpop.f32.mrb[28].mxu0  ;;  %v3319_v42 = vpop.f32.mrb[30].mxu1  ;;  %v2501_v63 = vsel %vm2437_vm13, %v2405_v54, %v2469_v32 }
 0x1ab   : > { %v2504_v13 = vsel %vm2440_vm14, %v2408_v28, %v2472_v37  ;;  %v3450_v19 = vadd.f32 %v3420_v55, %v3318_v8  ;;  %v2327_v39 = vpop.f32.mrb[29].mxu0  ;;  %v1187_v45 = vpop.f32.mrb[31].mxu1 }
 0x1ac   : > { %v3089_v10 = vpack.c.bf16 %v2504_v13, %v2503_v12  ;;  %v2502_v23 = vsel %vm2438_vm15, %v2406_v18, %v2470_v36  ;;  %v3451_v40 = vadd.f32 %v2327_v39, %v1184_v25  ;;  %v3421_v2 = vpop.f32.mrb[30].mxu0 }
 0x1ad   : > { %v3084_v38 = vpack.c.bf16 %v2502_v23, %v2501_v63  ;;  %v2411_v48 = vadd.f32 %v3450_v19, %v4275_v0  ;;  %v3452_v27 = vadd.f32 %v3421_v2, %v3319_v42  ;;  %v2330_v6 = vpop.f32.mrb[31].mxu0 }
 0x1ae   : > { %3113 = vst [vmem:[%s4285_s10 + $0x68] sm:$0xff] %v3089_v10   ;;  %v2409_v58 = vadd.f32 %v3451_v40, %v4275_v0  ;;  %v3453_v20 = vadd.f32 %v2330_v6, %v1187_v45 }
 0x1af   : > { %3112 = vst [vmem:[%s4285_s10 + $0x60] sm:$0xff] %v3084_v38   ;;  %v2475_v26 = vmul.f32 0.01, %v2411_v48  ;;  %v2412_v34 = vadd.f32 %v3452_v27, %v4275_v0  ;;  %vm2443_vm0 = vcmp.ge.f32.partialorder %v2411_v48, 0.0 }
 0x1b0   : > { %v2473_v53 = vmul.f32 0.01, %v2409_v58  ;;  %v2410_v56 = vadd.f32 %v3453_v20, %v4275_v0  ;;  %vm2441_vm1 = vcmp.ge.f32.partialorder %v2409_v58, 0.0 }
 0x1b1   : > { %vm2444_vm2 = vcmp.ge.f32.partialorder %v2412_v34, 0.0  ;;  %v2476_v46 = vmul.f32 0.01, %v2412_v34  ;;  %v2507_v62 = vsel %vm2443_vm0, %v2411_v48, %v2475_v26 }
 0x1b2   : > { %vm2442_vm3 = vcmp.ge.f32.partialorder %v2410_v56, 0.0  ;;  %v2474_v57 = vmul.f32 0.01, %v2410_v56  ;;  %v2505_v21 = vsel %vm2441_vm1, %v2409_v58, %v2473_v53 }
 0x1b3   : > { %v2508_v7 = vsel %vm2444_vm2, %v2412_v34, %v2476_v46 }
 0x1b4   : > { %v3099_v15 = vpack.c.bf16 %v2508_v7, %v2507_v62  ;;  %v2506_v35 = vsel %vm2442_vm3, %v2410_v56, %v2474_v57 }
 0x1b5   : > { %v3094_v51 = vpack.c.bf16 %v2506_v35, %v2505_v21 }
 0x1b6   : > { %3115 = vst [vmem:[%s4285_s10 + $0x78] sm:$0xff] %v3099_v15  }
 0x1b7   : > { %3114 = vst [vmem:[%s4285_s10 + $0x70] sm:$0xff] %v3094_v51  }
 0x1b8 PF: > { %s13_s14 = sadd.s32 1, %s3687_s14   ;;  %s4369_s12 = smov %s3683_s13 }
 0x1b9   : > { %p10_p5 = scmp.ge.s32.totalorder %s13_s14, 4   ;;  %s4370_s13 = smov %s4372_s15 }
 0x1bb   :  { %12 = sbr.rel (!%p10_p5) target bundleno = 2 (0x2), region = 68 }

// kernel: _lambda_.3
= control target key start
LH: loop header
LB: loop body
LE: loop exit
PB: predicated region body
PF: predicated region fallthrough
CT: control target
= control target key end

     0   :  { %s3528_s12 = smov 0   ;;  %s3530_s13 = smov 0   ;;  %s4258_s0 = inlined_call_operand.vmem [shape: bf16[2,2,1,262,64], index: 0, kind: input, shape index: {}]   ;;  %s4259_s1 = inlined_call_operand.vmem [shape: bf16[3,2,64,128], index: 1, kind: input, shape index: {}]   ;;  %s4260_s2 = inlined_call_operand.vmem [shape: f32[1,128], index: 2, kind: input, shape index: {}]   ;;  %s4261_s3 = inlined_call_operand.vmem [shape: f32[2,256,128], index: 3, kind: output, shape index: {}]  }
   0x1   :  { %s3532_s14 = smov 0  }
   0x2 LB: > { %s25_s15 = sadd.s32 1, %s3502_s13  ;;  %p2640_p0 = scmp.ge.s32.totalorder %s3506_s14, 1  ;;  %s3506_s14 = sphi %s3532_s14, %s13_s14   ;;  %s3502_s13 = sphi %s3530_s13, %s4328_s13   ;;  %s3498_s12 = sphi %s3528_s12, %s4327_s12  }
   0x3   : > { %p27_p1 = scmp.ge.s32.totalorder %s25_s15, 2  ;;  %p157_p2 = scmp.lt.s32.totalorder %s3506_s14, 3 }
   0x5   : > { %s4330_s15 = smov (%p27_p1, %s25_s15), 0  ;;  %p158_p3 = pnand %p2640_p0, %p157_p2 }
   0x7   : > { %161 = sbr.rel (%p158_p3) target bundleno = 440 (0x1b8), region = 32 }
   0xe   : > { %v3423_v0 = vld [vmem:[%s4259_s1 + $0x20] sm:$0xff]   ;;  %p189_p4 = scmp.lt.s32.totalorder %s3498_s12, 1  ;;  %v3425_v2 = vld [vmem:[%s4259_s1 + $0x28] sm:$0xff]   ;;  %v3427_v4 = vld [vmem:[%s4259_s1 + $0x30] sm:$0xff]   ;;  %vm342_vm0 = vsmask.f32 7424 }
   0xf   : > { %v3424_v1 = vld [vmem:[%s4259_s1 + $0x60] sm:$0xff]   ;;  %2998 = vmatprep.subr.bf16.mxu1 %v3423_v0  ;;  %v3426_v3 = vld [vmem:[%s4259_s1 + $0x68] sm:$0xff]   ;;  %v3428_v5 = vld [vmem:[%s4259_s1 + $0x70] sm:$0xff]   ;;  %vm499_vm1 = vcmask 523264   ;;  %vm1725_vm2 = vsmask.f32 5376 }
  0x10   : > { %s4332_s12 = smov (!%p189_p4, %s3498_s12), 1  ;;  %3118 = vmatprep.subr.bf16.mxu0 %v3424_v1  ;;  %2999 = vmatpush3.bf16.msra.mxu1 %v3423_v0  ;;  %v3429_v6 = vld [vmem:[%s4259_s1 + $0x38] sm:$0xff]   ;;  %v3436_v23 = vld [vmem:[%s4259_s1] sm:$0xff]   ;;  %vm2080_vm3 = vcmask 1044480  }
  0x11   : > { %3119 = vmatpush3.bf16.msra.mxu0 %v3424_v1  ;;  %3000 = vmatprep.subr.bf16.mxu1 %v3425_v2  ;;  %s3398_s26 = smul.u32 264, %s4332_s12  ;;  %v3430_v7 = vld [vmem:[%s4259_s1 + $0x78] sm:$0xff]   ;;  %v3438_v35 = vld [vmem:[%s4259_s1 + $0x80] sm:$0xff]   ;;  %s2877_s24 = sshll.u32 %s4332_s12, 8 }
  0x12   : > { %3120 = vmatprep.subr.bf16.mxu0 %v3426_v3  ;;  %s4185_s27 = scalar_lea.vmem %s4261_s3, %s2877_s24 }
  0x13   : > { %s3573_s6 = scalar_lea.vmem %s4258_s0, %s3398_s26 }
  0x14   : > { %3001 = vmatpush3.bf16.msra.mxu1 %v3425_v2  ;;  %v209_v8 = vld [vmem:[%s3573_s6] sm:$0xf]  ;;  %v3580_v9 = vld [vmem:[%s3573_s6 + $0x4] sm:$0xf]  ;;  %v3586_v11 = vld [vmem:[%s3573_s6 + $0x8] sm:$0xff]  }
  0x15   : > { %3121 = vmatpush3.bf16.msra.mxu0 %v3426_v3  ;;  %3002 = vmatprep.subr.bf16.mxu1 %v3427_v4  ;;  %v3583_v10 = vcombine.low %v209_v8, %v3580_v9  ;;  %v3589_v12 = vld [vmem:[%s3573_s6 + $0x84] sm:$0xff]   ;;  %v351_v15 = vshll.u32 %v3586_v11, 16  ;;  %v355_v16 = vshrl.u32 %v3586_v11, 16  ;;  %v3596_v17 = vld [vmem:[%s3573_s6 + $0x8c] sm:$0xff]   ;;  %v3614_v33 = vld [vmem:[%s3573_s6 + $0x94] sm:$0xff]  }
  0x16   : > { %3122 = vmatprep.subr.bf16.mxu0 %v3428_v5  ;;  %v1326_v18 = vshrl.u32 %v3589_v12, 16  ;;  %v1328_v19 = vshll.u32 %v3589_v12, 16  ;;  %v3601_v20 = vld [vmem:[%s3573_s6 + $0x10] sm:$0xff]   ;;  %v1332_v25 = vshll.u32 %v3596_v17, 16  ;;  %v1336_v26 = vshrl.u32 %v3596_v17, 16  ;;  %v3626_v41 = vld [vmem:[%s3573_s6 + $0x18] sm:$0xff]  }
  0x17   : > { %v344_v13 = vshrl.u32 %v3583_v10, 16  ;;  %v346_v14 = vshll.u32 %v3583_v10, 16  ;;  %v353_v22 = vrot.slane %v351_v15, 1  ;;  %v359_v27 = vshll.u32 %v3601_v20, 16  ;;  %v3633_v43 = vld [vmem:[%s3573_s6 + $0x9c] sm:$0xff]   ;;  %v3646_v52 = vld [vmem:[%s3573_s6 + $0xa4] sm:$0xff]  }
  0x18   : > { %3003 = vmatpush3.bf16.msra.mxu1 %v3427_v4  ;;  %v1330_v24 = vrot.slane %v1328_v19, 1  ;;  %v1334_v31 = vrot.slane %v1332_v25, 1  ;;  %v363_v36 = vshrl.u32 %v3601_v20, 16  ;;  %v1339_v40 = vshll.u32 %v3614_v33, 16  ;;  %v3637_v45 = vld [vmem:[%s3573_s6 + $0x20] sm:$0xff]   ;;  %v3657_v60 = vld [vmem:[%s3573_s6 + $0x28] sm:$0xff]  }
  0x19   : > { %3123 = vmatpush3.bf16.msra.mxu0 %v3428_v5  ;;  %3004 = vmatprep.subr.bf16.mxu1 %v3429_v6  ;;  %v348_v21 = vrot.slane %v346_v14, 1  ;;  %v357_v29 = vor.u32 %v355_v16, %v353_v22  ;;  %v361_v32 = vrot.slane %v359_v27, 1  ;;  %v3628_v42 = vrot.slane %v351_v15, 3  ;;  %v3664_v0 = vld [vmem:[%s3573_s6 + $0xac] sm:$0xff]  }
  0x1a   : > { %3124 = vmatprep.subr.bf16.mxu0 %v3430_v7  ;;  %v1331_v30 = vor.u32 %v1330_v24, %v1326_v18  ;;  %v1338_v38 = vor.u32 %v1336_v26, %v1334_v31  ;;  %v1343_v44 = vshrl.u32 %v3614_v33, 16  ;;  %v1341_v46 = vrot.slane %v1339_v40, 1  ;;  %v3446_v14 = vld [vmem:[%s4259_s1 + $0x8] sm:$0xff]   ;;  %v3688_v24 = vld [vmem:[%s3573_s6 + $0xb4] sm:$0xff]  }
  0x1b   : > { %v349_v28 = vor.u32 %v348_v21, %v344_v13  ;;  %v362_v39 = vsel %vm342_vm0, %v357_v29, %v361_v32  ;;  %v365_v47 = vor.u32 %v363_v36, %v361_v32  ;;  %v4281_v48 = vshll.u32 %v3626_v41, 16  ;;  %v3676_v13 = vld [vmem:[%s3573_s6 + $0x30] sm:$0xff]   ;;  %v3448_v29 = vld [vmem:[%s4259_s1 + $0x88] sm:$0xff]  }
  0x1c   : > { %3005 = vmatpush3.bf16.msra.mxu1 %v3429_v6  ;;  %v1335_v37 = vsel %vm342_vm0, %v1331_v30, %v1334_v31  ;;  %v1346_v49 = vshll.u32 %v3633_v43, 16  ;;  %v4284_v50 = vshrl.u32 %v3626_v41, 16  ;;  %v4285_v51 = vshll.u32 %v3637_v45, 16 }
  0x1d   : > { %3125 = vmatpush3.bf16.msra.mxu0 %v3430_v7  ;;  %3038 = vmatprep.subr.bf16.mxu1 %v3436_v23  ;;  %v354_v34 = vsel %vm342_vm0, %v349_v28, %v353_v22  ;;  %v1342_v53 = vsel %vm342_vm0, %v1338_v38, %v1341_v46  ;;  %v369_v54 = vrot.slane %v4281_v48, 1  ;;  %v1345_v55 = vor.u32 %v1343_v44, %v1341_v46  ;;  %v3711_v44 = vld [vmem:[%s3573_s6 + $0xbc] sm:$0xff]   ;;  %v3472_v48 = vld [vmem:[%s3573_s6 + $0x104] ss:$0 sps:$4 sm:$0x11]  }
  0x1e   : > { %3006 = vmatprep.mubr.msk.bf16.mxu1 %vm499_vm1, %v354_v34  ;;  %3126 = vmatprep.mubr.msk.bf16.mxu0 %vm499_vm1, %v1335_v37  ;;  %v1350_v56 = vshrl.u32 %v3633_v43, 16  ;;  %v1348_v57 = vrot.slane %v1346_v49, 1  ;;  %v377_v58 = vrot.slane %v4285_v51, 1  ;;  %v1353_v59 = vshll.u32 %v3646_v52, 16  ;;  %v3717_v49 = vld [vmem:[%s3573_s6 + $0x40] sm:$0xff]  }
  0x1f   : > { %3007 = vmatmul.mubr.msk.bf16.vlgmr.msra.gmra.mrb[0].mxu1 %vm499_vm1, %v362_v39  ;;  %3158 = vmatprep.subr.bf16.mxu0 %v3438_v35  ;;  %v370_v61 = vsel %vm342_vm0, %v365_v47, %v369_v54  ;;  %v373_v62 = vor.u32 %v4284_v50, %v369_v54  ;;  %v379_v63 = vshrl.u32 %v3637_v45, 16  ;;  %v4278_v4 = vshll.u32 %v3657_v60, 16  ;;  %v3721_v54 = vld [vmem:[%s3573_s6 + $0xc4] sm:$0xff]   ;;  %v1707_v51 = vld [vmem:[%s3573_s6] sm:$0xc] }
  0x20   : > { %3039 = vmatpush3.bf16.msra.mxu1 %v3436_v23  ;;  %3127 = vmatmul.mubr.msk.bf16.vlgmr.msra.gmra.mrb[0].mxu0 %vm499_vm1, %v1342_v53  ;;  %v1349_v1 = vsel %vm342_vm0, %v1345_v55, %v1348_v57  ;;  %v1352_v2 = vor.u32 %v1350_v56, %v1348_v57  ;;  %v1355_v3 = vrot.slane %v1353_v59, 1  ;;  %v1357_v7 = vshrl.u32 %v3646_v52, 16 }
  0x21   : > { %3159 = vmatpush3.bf16.msra.mxu0 %v3438_v35  ;;  %3010 = vmatprep.mubr.msk.bf16.mxu1 %vm499_vm1, %v370_v61  ;;  %v378_v5 = vsel %vm342_vm0, %v373_v62, %v377_v58  ;;  %v381_v6 = vor.u32 %v379_v63, %v377_v58  ;;  %v1360_v8 = vshll.u32 %v3664_v0, 16  ;;  %v385_v18 = vrot.slane %v4278_v4, 1  ;;  %v3705_v35 = vld [vmem:[%s3573_s6 + $0x38] sm:$0xff]   ;;  %v3731_v62 = vld [vmem:[%s3573_s6 + $0x48] sm:$0xff]  }
  0x22   : > { %3130 = vmatprep.mubr.msk.bf16.mxu0 %vm499_vm1, %v1349_v1  ;;  %v1356_v15 = vsel %vm342_vm0, %v1352_v2, %v1355_v3  ;;  %v4279_v19 = vshrl.u32 %v3657_v60, 16  ;;  %v1359_v21 = vor.u32 %v1357_v7, %v1355_v3  ;;  %v4273_v23 = vshll.u32 %v3676_v13, 16  ;;  %3040 = vmatprep.subr.bf16.mxu1 %v3446_v14 }
  0x23   : > { %v1362_v22 = vrot.slane %v1360_v8, 1  ;;  %v1364_v25 = vshrl.u32 %v3664_v0, 16  ;;  %v386_v26 = vsel %vm342_vm0, %v381_v6, %v385_v18  ;;  %v4274_v30 = vshrl.u32 %v3676_v13, 16  ;;  %3160 = vmatprep.subr.bf16.mxu0 %v3448_v29 }
  0x24   : > { %v389_v28 = vor.u32 %v4279_v19, %v385_v18  ;;  %3041 = vmatpush3.bf16.msra.mxu1 %v3446_v14  ;;  %v393_v32 = vrot.slane %v4273_v23, 1  ;;  %v1367_v34 = vshll.u32 %v3688_v24, 16  ;;  %v1371_v37 = vshrl.u32 %v3688_v24, 16  ;;  %v3741_v14 = vld [vmem:[%s3573_s6 + $0xcc] sm:$0xff]  }
  0x25   : > { %v1363_v31 = vsel %vm342_vm0, %v1359_v21, %v1362_v22  ;;  %v1366_v39 = vor.u32 %v1364_v25, %v1362_v22  ;;  %3161 = vmatpush3.bf16.msra.mxu0 %v3448_v29  ;;  %v4269_v47 = vshll.u32 %v3705_v35, 16  ;;  %v4272_v53 = vshrl.u32 %v3705_v35, 16  ;;  %v3456_v29 = vld [vmem:[%s4259_s1 + $0x10] sm:$0xff]  }
  0x26   : > { %v394_v38 = vsel %vm342_vm0, %v389_v28, %v393_v32  ;;  %v1369_v40 = vrot.slane %v1367_v34, 1  ;;  %v397_v46 = vor.u32 %v4274_v30, %v393_v32  ;;  %v1374_v56 = vshll.u32 %v3711_v44, 16  ;;  %3042 = vmatprep.subr.bf16.mxu1 %v3456_v29 }
  0x27   : > { %3011 = vmatmul.mubr.msk.bf16.gmra.mrb[4].mxu1 %vm499_vm1, %v378_v5  ;;  %v1378_v57 = vshrl.u32 %v3711_v44, 16  ;;  %v401_v58 = vrot.slane %v4269_v47, 1  ;;  %v4267_v59 = vshll.u32 %v3717_v49, 16  ;;  %v1381_v61 = vshll.u32 %v3721_v54, 16 }
  0x28   : > { %3014 = vmatprep.mubr.msk.bf16.mxu1 %vm499_vm1, %v386_v26  ;;  %3131 = vmatmul.mubr.msk.bf16.gmra.mrb[4].mxu0 %vm499_vm1, %v1356_v15  ;;  %v1373_v55 = vor.u32 %v1371_v37, %v1369_v40  ;;  %v1370_v1 = vsel %vm342_vm0, %v1366_v39, %v1369_v40  ;;  %v1376_v2 = vrot.slane %v1374_v56, 1  ;;  %v4268_v3 = vshrl.u32 %v3717_v49, 16  ;;  %v3744_v15 = vld [vmem:[%s3573_s6 + $0x50] sm:$0xff]  }
  0x29   : > { %3134 = vmatprep.mubr.msk.bf16.mxu0 %vm499_vm1, %v1363_v31  ;;  %v402_v5 = vsel %vm342_vm0, %v397_v46, %v401_v58  ;;  %v405_v6 = vor.u32 %v4272_v53, %v401_v58  ;;  %v409_v7 = vrot.slane %v4267_v59, 1  ;;  %v1383_v8 = vrot.slane %v1381_v61, 1  ;;  %v3759_v31 = vld [vmem:[%s3573_s6 + $0xd4] sm:$0xff]   ;;  %3043 = vmatpush3.bf16.msra.mxu1 %v3456_v29 }
  0x2a   : > { %v1377_v18 = vsel %vm342_vm0, %v1373_v55, %v1376_v2  ;;  %v4265_v21 = vshll.u32 %v3731_v62, 16  ;;  %v1385_v22 = vshrl.u32 %v3721_v54, 16  ;;  %v1388_v26 = vshll.u32 %v3741_v14, 16  ;;  %v3458_v56 = vld [vmem:[%s4259_s1 + $0x90] sm:$0xff]   ;;  %v3775_v61 = vld [vmem:[%s3573_s6 + $0x58] sm:$0xff]  }
  0x2b   : > { %v413_v25 = vor.u32 %v4268_v3, %v409_v7  ;;  %v4266_v28 = vshrl.u32 %v3731_v62, 16  ;;  %v410_v32 = vsel %vm342_vm0, %v405_v6, %v409_v7  ;;  %v1380_v34 = vor.u32 %v1378_v57, %v1376_v2  ;;  %3162 = vmatprep.subr.bf16.mxu0 %v3458_v56 }
  0x2c   : > { %v417_v37 = vrot.slane %v4265_v21, 1  ;;  %v1387_v39 = vor.u32 %v1385_v22, %v1383_v8  ;;  %v1390_v40 = vrot.slane %v1388_v26, 1  ;;  %v1392_v46 = vshrl.u32 %v3741_v14, 16  ;;  %3163 = vmatpush3.bf16.msra.mxu0 %v3458_v56  ;;  %v3803_v56 = vld [vmem:[%s3573_s6 + $0x68] sm:$0xff]  }
  0x2d   : > { %v1395_v55 = vshll.u32 %v3759_v31, 16  ;;  %v4263_v2 = vshrl.u32 %v3744_v15, 16  ;;  %v4264_v7 = vshll.u32 %v3775_v61, 16  ;;  %v1399_v22 = vshrl.u32 %v3759_v31, 16 }
  0x2e   : > { %v418_v57 = vsel %vm342_vm0, %v413_v25, %v417_v37  ;;  %v421_v6 = vor.u32 %v4266_v28, %v417_v37  ;;  %v3789_v25 = vld [vmem:[%s3573_s6 + $0x60] sm:$0xff]   ;;  %v1391_v26 = vsel %vm342_vm0, %v1387_v39, %v1390_v40  ;;  %v1394_v39 = vor.u32 %v1392_v46, %v1390_v40  ;;  %v3816_v46 = vld [vmem:[%s3573_s6 + $0xec] sm:$0xff]  }
  0x2f   : > { %3015 = vmatmul.mubr.msk.bf16.gmra.mrb[8].mxu1 %vm499_vm1, %v394_v38  ;;  %v4262_v38 = vshll.u32 %v3744_v15, 16  ;;  %v4270_v40 = vshll.u32 %v3803_v56, 16  ;;  %4294 = vst [vmem:[#allocation4_spill] sm:$0xff] %v3816_v46  ;;  %v1420_v30 = vshrl.u32 %v3816_v46, 16 }
  0x30   : > { %3018 = vmatprep.mubr.msk.bf16.mxu1 %vm499_vm1, %v402_v5  ;;  %3135 = vmatmul.mubr.msk.bf16.gmra.mrb[8].mxu0 %vm499_vm1, %v1370_v1  ;;  %v1397_v1 = vrot.slane %v1395_v55, 1  ;;  %v1384_v5 = vsel %vm342_vm0, %v1380_v34, %v1383_v8  ;;  %v4276_v8 = vshrl.u32 %v3775_v61, 16  ;;  %v433_v34 = vrot.slane %v4264_v7, 1 }
  0x31   : > { %3138 = vmatprep.mubr.msk.bf16.mxu0 %vm499_vm1, %v1377_v18  ;;  %v425_v58 = vrot.slane %v4262_v38, 1  ;;  %v3785_v18 = vld [vmem:[%s3573_s6 + $0xdc] sm:$0xff]   ;;  %v4271_v55 = vshll.u32 %v3789_v25, 16 }
  0x32   : > { %4292 = vst [vmem:[#allocation2_spill] sm:$0xff] %v3785_v18  ;;  %v1402_v37 = vshll.u32 %v3785_v18, 16  ;;  %v1401_v7 = vor.u32 %v1399_v22, %v1397_v1  ;;  %v3466_v22 = vld [vmem:[%s4259_s1 + $0x18] sm:$0xff]  }
  0x33   : > { %v429_v29 = vor.u32 %v4263_v2, %v425_v58  ;;  %v426_v2 = vsel %vm342_vm0, %v421_v6, %v425_v58  ;;  %v441_v28 = vrot.slane %v4271_v55, 1  ;;  %v449_v58 = vrot.slane %v4270_v40, 1  ;;  %v3838_v55 = vld [vmem:[%s3573_s6 + $0xf4] sm:$0xff]   ;;  %3044 = vmatprep.subr.bf16.mxu1 %v3466_v22 }
  0x34   : > { %v1404_v21 = vrot.slane %v1402_v37, 1  ;;  %v1416_v6 = vshll.u32 %v3816_v46, 16  ;;  %v437_v37 = vor.u32 %v4276_v8, %v433_v34  ;;  %4295 = vst [vmem:[#allocation5_spill] sm:$0xff] %v3838_v55  ;;  %3045 = vmatpush3.bf16.msra.mxu1 %v3466_v22  ;;  %v3854_v8 = vld [vmem:[%s3573_s6 + $0xfc] sm:$0xff]  }
  0x35   : > { %v434_v59 = vsel %vm342_vm0, %v429_v29, %v433_v34  ;;  %v1398_v29 = vsel %vm342_vm0, %v1394_v39, %v1397_v1  ;;  %v1423_v1 = vshll.u32 %v3838_v55, 16  ;;  %v3468_v34 = vld [vmem:[%s4259_s1 + $0x98] sm:$0xff]   ;;  %4296 = vst [vmem:[#allocation6_spill] sm:$0xff] %v3854_v8 }
  0x36   : > { %v1405_v53 = vsel %vm342_vm0, %v1401_v7, %v1404_v21  ;;  %v1418_v23 = vrot.slane %v1416_v6, 1  ;;  %v3849_v39 = vld [vmem:[%s3573_s6 + $0x78] sm:$0xff]   ;;  %3164 = vmatprep.subr.bf16.mxu0 %v3468_v34 }
  0x37   : > { %3019 = vmatmul.mubr.msk.bf16.gmra.mrb[12].mxu1 %vm499_vm1, %v410_v32  ;;  %v3796_v32 = vld [vmem:[%s3573_s6 + $0xe4] sm:$0xff]   ;;  %v1425_v19 = vrot.slane %v1423_v1, 1  ;;  %v4282_v22 = vshll.u32 %v3849_v39, 16  ;;  %3165 = vmatpush3.bf16.msra.mxu0 %v3468_v34  ;;  %v3877_v1 = vrot.slane %v359_v27, 3  ;;  %v3881_v34 = vrot.slane %v363_v36, 2 }
  0x38   : > { %3022 = vmatprep.mubr.msk.bf16.mxu1 %vm499_vm1, %v418_v57  ;;  %4293 = vst [vmem:[#allocation3_spill] sm:$0xff] %v3796_v32  ;;  %3139 = vmatmul.mubr.msk.bf16.gmra.mrb[12].mxu0 %vm499_vm1, %v1384_v5  ;;  %v1406_v57 = vshrl.u32 %v3785_v18, 16  ;;  %v1409_v38 = vshll.u32 %v3796_v32, 16  ;;  %v4275_v5 = vshrl.u32 %v3789_v25, 16  ;;  %v1413_v47 = vshrl.u32 %v3796_v32, 16  ;;  %v3894_v36 = vld [vmem:[%s4259_s1 + $0xa0] sm:$0xff]  }
  0x39   : > { %3142 = vmatprep.mubr.msk.bf16.mxu0 %vm499_vm1, %v1391_v26  ;;  %v3820_v26 = vld [vmem:[%s3573_s6 + $0x70] sm:$0xff]   ;;  %v1434_v27 = vshrl.u32 %v3854_v8, 16  ;;  %3198 = vmatprep.subr.bf16.mxu0 %v3894_v36 }
  0x3a   : > { %v1411_v3 = vrot.slane %v1409_v38, 1  ;;  %v4280_v38 = vshrl.u32 %v3803_v56, 16  ;;  %v4277_v40 = vshll.u32 %v3820_v26, 16  ;;  %v4283_v6 = vshrl.u32 %v3820_v26, 16 }
  0x3c   : > { %v1415_v7 = vor.u32 %v1413_v47, %v1411_v3  ;;  %v1427_v47 = vshrl.u32 %v3838_v55, 16 }
  0x3f   : > { %3023 = vmatmul.mubr.msk.bf16.gmra.mrb[16].mxu1 %vm499_vm1, %v426_v2  ;;  %v445_v2 = vor.u32 %v4275_v5, %v441_v28  ;;  %v1408_v5 = vor.u32 %v1406_v57, %v1404_v21  ;;  %v453_v21 = vor.u32 %v4280_v38, %v449_v58  ;;  %v1430_v57 = vshll.u32 %v3854_v8, 16 }
  0x40   : > { %3026 = vmatprep.mubr.msk.bf16.mxu1 %vm499_vm1, %v434_v59  ;;  %v457_v59 = vrot.slane %v4277_v40, 1  ;;  %3143 = vmatmul.mubr.msk.bf16.gmra.mrb[16].mxu0 %vm499_vm1, %v1398_v29  ;;  %v442_v40 = vsel %vm342_vm0, %v437_v37, %v441_v28  ;;  %v4286_v29 = vshrl.u32 %v3849_v39, 16  ;;  %v1422_v28 = vor.u32 %v1420_v30, %v1418_v23 }
  0x41   : > { %3146 = vmatprep.mubr.msk.bf16.mxu0 %vm499_vm1, %v1405_v53  ;;  %v450_v4 = vsel %vm342_vm0, %v445_v2, %v449_v58  ;;  %v3868_v53 = vld [vmem:[%s4259_s1 + $0x40] sm:$0xff]   ;;  %v465_v58 = vrot.slane %v4282_v22, 1  ;;  %v1412_v30 = vsel %vm342_vm0, %v1408_v5, %v1411_v3  ;;  %v1419_v38 = vsel %vm342_vm0, %v1415_v7, %v1418_v23 }
  0x42   : > { %v461_v37 = vor.u32 %v4283_v6, %v457_v59  ;;  %v3471_v2 = vld [vmem:[%s3573_s6 + $0x80] ss:$0 sps:$4 sm:$0x11]   ;;  %3078 = vmatprep.subr.bf16.mxu1 %v3868_v53  ;;  %v1429_v22 = vor.u32 %v1427_v47, %v1425_v19  ;;  %v1432_v6 = vrot.slane %v1430_v57, 1  ;;  %v458_v3 = vsel %vm342_vm0, %v453_v21, %v457_v59 }
  0x43   : > { %v471_v50 = vshll.u32 %v3471_v2, 16  ;;  %v1438_v5 = vshll.u32 %v3472_v48, 16  ;;  %v2823_v23 = vcombine.low %v1707_v51, %v3580_v9  ;;  %v469_v47 = vor.u32 %v4286_v29, %v465_v58 }
  0x44   : > { %v466_v7 = vsel %vm342_vm0, %v461_v37, %v465_v58  ;;  %v1436_v51 = vor.u32 %v1434_v27, %v1432_v6  ;;  %v4298_v29 = vshrl.u32 %v3626_v41, 16 }
  0x45   : > { %v473_v57 = vrot.slane %v471_v50, 1  ;;  %v1440_v59 = vrot.slane %v1438_v5, 1  ;;  %v1727_v48 = vshrl.u32 %v2823_v23, 16  ;;  %v1730_v21 = vshll.u32 %v2823_v23, 16 }
  0x46   : > { %v4299_v50 = vshll.u32 %v3626_v41, 16  ;;  %v4302_v23 = vshrl.u32 %v3676_v13, 16 }
  0x47   : > { %3027 = vmatmul.mubr.msk.bf16.gmra.mrb[20].mxu1 %vm499_vm1, %v442_v40  ;;  %v1734_v40 = vrot.slane %v355_v16, 2  ;;  %v1433_v16 = vsel %vm342_vm0, %v1429_v22, %v1432_v6  ;;  %v1729_v58 = vrot.slane %v1727_v48, 2  ;;  %v1732_v2 = vrot.slane %v1730_v21, 3 }
  0x48   : > { %3030 = vmatprep.mubr.msk.bf16.mxu1 %vm499_vm1, %v450_v4  ;;  %v1426_v4 = vsel %vm342_vm0, %v1422_v28, %v1425_v19  ;;  %3147 = vmatmul.mubr.msk.bf16.gmra.mrb[20].mxu0 %vm499_vm1, %v1412_v30  ;;  %v1746_v19 = vrot.slane %v379_v63, 2  ;;  %v4297_v28 = vshll.u32 %v3637_v45, 16  ;;  %v3914_v30 = vrot.slane %v4298_v29, 2 }
  0x49   : > { %3150 = vmatprep.mubr.msk.bf16.mxu0 %vm499_vm1, %v1419_v38  ;;  %v3918_v5 = vrot.slane %v4299_v50, 3  ;;  %v4300_v6 = vshrl.u32 %v3657_v60, 16  ;;  %v4301_v63 = vshll.u32 %v3657_v60, 16  ;;  %v1754_v48 = vrot.slane %v4302_v23, 2 }
  0x4a   : > { %v1747_v37 = vrot.slane %v4297_v28, 3  ;;  %v474_v29 = vsel %vm342_vm0, %v469_v47, %v473_v57  ;;  %v3931_v21 = vor.u32 %v3628_v42, %v1734_v40  ;;  %v4303_v28 = vshll.u32 %v3676_v13, 16 }
  0x4b   : > { %v1750_v22 = vrot.slane %v4300_v6, 2  ;;  %v1751_v27 = vrot.slane %v4301_v63, 3  ;;  %v1441_v6 = vsel %vm342_vm0, %v1436_v51, %v1440_v59  ;;  %v4305_v23 = vshll.u32 %v3705_v35, 16 }
  0x4c   : > { %v3920_v38 = vor.u32 %v1747_v37, %v1746_v19  ;;  %v1755_v19 = vrot.slane %v4303_v28, 3  ;;  %v4304_v37 = vshrl.u32 %v3705_v35, 16  ;;  %v1733_v57 = vor.u32 %v1732_v2, %v1729_v58 }
  0x4d   : > { %v1752_v63 = vor.u32 %v1751_v27, %v1750_v22  ;;  %v1759_v8 = vrot.slane %v4305_v23, 3  ;;  %v4307_v40 = vshll.u32 %v3717_v49, 16  ;;  %v4308_v28 = vshrl.u32 %v3731_v62, 16 }
  0x4e   : > { %v1758_v50 = vrot.slane %v4304_v37, 2  ;;  %v1756_v42 = vor.u32 %v1755_v19, %v1754_v48  ;;  %v4309_v51 = vshll.u32 %v3731_v62, 16  ;;  %v4310_v27 = vshrl.u32 %v3744_v15, 16 }
  0x4f   : > { %3031 = vmatmul.mubr.msk.bf16.gmra.mrb[24].mxu1 %vm499_vm1, %v458_v3  ;;  %v4306_v3 = vshrl.u32 %v3717_v49, 16  ;;  %v1763_v55 = vrot.slane %v4307_v40, 3  ;;  %v1766_v37 = vrot.slane %v4308_v28, 2  ;;  %v4311_v48 = vshll.u32 %v3744_v15, 16 }
  0x50   : > { %3034 = vmatprep.mubr.msk.bf16.mxu1 %vm499_vm1, %v466_v7  ;;  %v3949_v7 = vsel %vm1725_vm2, %v3920_v38, %v1752_v63  ;;  %v1760_v59 = vor.u32 %v1759_v8, %v1758_v50  ;;  %v1767_v22 = vrot.slane %v4309_v51, 3  ;;  %v1770_v23 = vrot.slane %v4310_v27, 2  ;;  %3151 = vmatmul.mubr.msk.bf16.gmra.mrb[24].mxu0 %vm499_vm1, %v1426_v4  ;;  %v3972_v27 = vld [vmem:[%s3573_s6 + $0x80] ss:$0 sps:$4 sm:$0x77]  }
  0x51   : > { %v1762_v47 = vrot.slane %v4306_v3, 2  ;;  %v3957_v58 = vsel %vm1725_vm2, %v1752_v63, %v1756_v42  ;;  %v1771_v19 = vrot.slane %v4311_v48, 3  ;;  %v4312_v3 = vshrl.u32 %v3775_v61, 16  ;;  %3154 = vmatprep.mubr.msk.bf16.mxu0 %vm499_vm1, %v1433_v16 }
  0x52   : > { %v3965_v8 = vsel %vm1725_vm2, %v1756_v42, %v1760_v59  ;;  %v1768_v50 = vor.u32 %v1767_v22, %v1766_v37  ;;  %v4313_v28 = vshll.u32 %v3775_v61, 16  ;;  %v4314_v4 = vshrl.u32 %v3789_v25, 16 }
  0x53   : > { %v1764_v2 = vor.u32 %v1763_v55, %v1762_v47  ;;  %v1774_v40 = vrot.slane %v4312_v3, 2  ;;  %v1772_v47 = vor.u32 %v1771_v19, %v1770_v23  ;;  %v4315_v48 = vshll.u32 %v3789_v25, 16 }
  0x54   : > { %v1775_v51 = vrot.slane %v4313_v28, 3  ;;  %v1778_v63 = vrot.slane %v4314_v4, 2  ;;  %v4316_v16 = vshrl.u32 %v3803_v56, 16  ;;  %v4317_v28 = vshll.u32 %v3803_v56, 16 }
  0x55   : > { %v3975_v55 = vsel %vm1725_vm2, %v1760_v59, %v1764_v2  ;;  %v1779_v3 = vrot.slane %v4315_v48, 3  ;;  %v3982_v37 = vsel %vm1725_vm2, %v1764_v2, %v1768_v50  ;;  %v4318_v4 = vshrl.u32 %v3820_v26, 16 }
  0x56   : > { %v1782_v42 = vrot.slane %v4316_v16, 2  ;;  %v1776_v22 = vor.u32 %v1775_v51, %v1774_v40  ;;  %v1783_v46 = vrot.slane %v4317_v28, 3  ;;  %v3990_v59 = vsel %vm1725_vm2, %v1768_v50, %v1772_v47 }
  0x57   : > { %v1786_v32 = vrot.slane %v4318_v4, 2  ;;  %3035 = vmatmul.mubr.msk.bf16.gmra.mrb[28].mxu1 %vm499_vm1, %v474_v29  ;;  %v1780_v23 = vor.u32 %v1779_v3, %v1778_v63  ;;  %v4319_v19 = vshll.u32 %v3820_v26, 16  ;;  %v4320_v16 = vshrl.u32 %v3849_v39, 16 }
  0x58   : > { %3046 = vmatprep.mubr.msk.bf16.mxu1 %vm499_vm1, %v3583_v10  ;;  %v1777_v40 = vsel %vm1725_vm2, %v1772_v47, %v1776_v22  ;;  %v1784_v51 = vor.u32 %v1783_v46, %v1782_v42  ;;  %v4321_v28 = vshll.u32 %v3849_v39, 16  ;;  %v1795_v29 = vshrl.u32 %v3972_v27, 16  ;;  %3155 = vmatmul.mubr.msk.bf16.gmra.mrb[28].mxu0 %vm499_vm1, %v1441_v6 }
  0x59   : > { %v1787_v48 = vrot.slane %v4319_v19, 3  ;;  %v1790_v2 = vrot.slane %v4320_v16, 2  ;;  %v1737_v50 = vsel %vm1725_vm2, %v1733_v57, %v3931_v21  ;;  %v1781_v63 = vsel %vm1725_vm2, %v1776_v22, %v1780_v23  ;;  %v3476_v22 = vld [vmem:[%s4259_s1 + $0x48] sm:$0xff]  }
  0x5a   : > { %v1791_v4 = vrot.slane %v4321_v28, 3  ;;  %v1798_v19 = vshll.u32 %v3972_v27, 16  ;;  %v1785_v16 = vsel %vm1725_vm2, %v1780_v23, %v1784_v51  ;;  %v1797_v10 = vrot.slane %v1795_v29, 2  ;;  %3166 = vmatprep.mubr.msk.bf16.mxu0 %vm499_vm1, %v1737_v50 }
  0x5b   : > { %v1788_v3 = vor.u32 %v1787_v48, %v1786_v32  ;;  %v1740_v42 = vor.u32 %v3877_v1, %v3881_v34  ;;  %v1744_v32 = vor.u32 %v3918_v5, %v3914_v30  ;;  %v3477_v34 = vld [vmem:[%s4259_s1 + $0xa8] sm:$0xff]   ;;  %v3478_v30 = vld [vmem:[%s4259_s1 + $0x50] sm:$0xff]  }
  0x5c   : > { %v1792_v18 = vor.u32 %v1791_v4, %v1790_v2  ;;  %v1800_v47 = vrot.slane %v1798_v19, 3  ;;  %v2108_v2 = vrot.slane %v3820_v26, 3  ;;  %v2112_v4 = vrot.slane %v3972_v27, 3 }
  0x5d   : > { %v1789_v46 = vsel %vm1725_vm2, %v1784_v51, %v1788_v3  ;;  %v1741_v48 = vsel %vm1725_vm2, %v3931_v21, %v1740_v42  ;;  %v1745_v1 = vsel %vm1725_vm2, %v1740_v42, %v1744_v32  ;;  %v1749_v5 = vsel %vm1725_vm2, %v1744_v32, %v3920_v38  ;;  %v1709_v38 = vld [vmem:[%s3573_s6] sm:$0x8]  ;;  %v4325_v51 = vld [vmem:[#allocation5_spill] sm:$0xff] }
  0x5e   : > { %v1793_v57 = vsel %vm1725_vm2, %v1788_v3, %v1792_v18  ;;  %v1801_v23 = vor.u32 %v1800_v47, %v1797_v10  ;;  %v2853_v21 = vcombine.low %v1709_v38, %v3580_v9  ;;  %v2084_v9 = vrot.slane %v3601_v20, 3 }
  0x5f   : > { %3047 = vmatmul.mubr.msk.bf16.vlgmr.msra.gmra.mrb[0].mxu1 %vm499_vm1, %v3586_v11 }
  0x60   : > { %v1802_v6 = vsel %vm1725_vm2, %v1792_v18, %v1801_v23  ;;  %3079 = vmatpush3.bf16.msra.mxu1 %v3868_v53  ;;  %3050 = vmatprep.mubr.msk.bf16.mxu1 %vm499_vm1, %v3601_v20  ;;  %v3479_v18 = vld [vmem:[%s4259_s1 + $0xb0] sm:$0xff]   ;;  %v3480_v53 = vld [vmem:[%s4259_s1 + $0x58] sm:$0xff]   ;;  %v2090_v20 = vrot.slane %v3657_v60, 3 }
  0x61   : > { %3080 = vmatprep.subr.bf16.mxu1 %v3476_v22  ;;  %3167 = vmatmul.mubr.msk.bf16.vlgmr.msra.gmra.mrb[0].mxu0 %vm499_vm1, %v1741_v48 }
  0x62   : > { %3199 = vmatpush3.bf16.msra.mxu0 %v3894_v36  ;;  %3170 = vmatprep.mubr.msk.bf16.mxu0 %vm499_vm1, %v1745_v1  ;;  %v3481_v36 = vld [vmem:[%s4259_s1 + $0xb8] sm:$0xff]  }
  0x63   : > { %3200 = vmatprep.subr.bf16.mxu0 %v3477_v34 }
  0x64   : > { %3081 = vmatpush3.bf16.msra.mxu1 %v3476_v22 }
  0x65   : > { %3082 = vmatprep.subr.bf16.mxu1 %v3478_v30 }
  0x66   : > { %3201 = vmatpush3.bf16.msra.mxu0 %v3477_v34 }
  0x67   : > { %3051 = vmatmul.mubr.msk.bf16.gmra.mrb[4].mxu1 %vm499_vm1, %v3626_v41  ;;  %3202 = vmatprep.subr.bf16.mxu0 %v3479_v18 }
  0x68   : > { %3054 = vmatprep.mubr.msk.bf16.mxu1 %vm499_vm1, %v3637_v45  ;;  %3083 = vmatpush3.bf16.msra.mxu1 %v3478_v30 }
  0x69   : > { %3084 = vmatprep.subr.bf16.mxu1 %v3480_v53  ;;  %3171 = vmatmul.mubr.msk.bf16.gmra.mrb[4].mxu0 %vm499_vm1, %v1749_v5 }
  0x6a   : > { %3174 = vmatprep.mubr.msk.bf16.mxu0 %vm499_vm1, %v3949_v7  ;;  %3203 = vmatpush3.bf16.msra.mxu0 %v3479_v18  ;;  %v2081_v7 = vrot.slane %v2853_v21, 3 }
  0x6b   : > { %3204 = vmatprep.subr.bf16.mxu0 %v3481_v36 }
  0x6c   : > { %3085 = vmatpush3.bf16.msra.mxu1 %v3480_v53 }
  0x6e   : > { %3205 = vmatpush3.bf16.msra.mxu0 %v3481_v36 }
  0x6f   : > { %3055 = vmatmul.mubr.msk.bf16.gmra.mrb[8].mxu1 %vm499_vm1, %v3657_v60  ;;  %v2096_v60 = vrot.slane %v3717_v49, 3 }
  0x70   : > { %3058 = vmatprep.mubr.msk.bf16.mxu1 %vm499_vm1, %v3676_v13 }
  0x71   : > { %3175 = vmatmul.mubr.msk.bf16.gmra.mrb[8].mxu0 %vm499_vm1, %v3957_v58  ;;  %v2082_v58 = vrot.slane %v3586_v11, 3 }
  0x72   : > { %3178 = vmatprep.mubr.msk.bf16.mxu0 %vm499_vm1, %v3965_v8 }
  0x73   : > { %v2083_v8 = vsel %vm2080_vm3, %v2081_v7, %v2082_v58  ;;  %v2085_v11 = vsel %vm2080_vm3, %v2082_v58, %v2084_v9 }
  0x77   : > { %3059 = vmatmul.mubr.msk.bf16.gmra.mrb[12].mxu1 %vm499_vm1, %v3705_v35 }
  0x78   : > { %3062 = vmatprep.mubr.msk.bf16.mxu1 %vm499_vm1, %v3717_v49  ;;  %v2102_v49 = vrot.slane %v3775_v61, 3 }
  0x79   : > { %3179 = vmatmul.mubr.msk.bf16.gmra.mrb[12].mxu0 %vm499_vm1, %v3975_v55  ;;  %v2086_v55 = vrot.slane %v3626_v41, 3  ;;  %v2092_v41 = vrot.slane %v3676_v13, 3  ;;  %v2098_v13 = vrot.slane %v3731_v62, 3 }
  0x7a   : > { %3182 = vmatprep.mubr.msk.bf16.mxu0 %vm499_vm1, %v3982_v37  ;;  %v2088_v37 = vrot.slane %v3637_v45, 3  ;;  %v2094_v45 = vrot.slane %v3705_v35, 3  ;;  %v2100_v35 = vrot.slane %v3744_v15, 3 }
  0x7f   : > { %3063 = vmatmul.mubr.msk.bf16.gmra.mrb[16].mxu1 %vm499_vm1, %v3731_v62  ;;  %v2104_v62 = vrot.slane %v3789_v25, 3 }
  0x80   : > { %3066 = vmatprep.mubr.msk.bf16.mxu1 %vm499_vm1, %v3744_v15  ;;  %v2106_v15 = vrot.slane %v3803_v56, 3 }
  0x81   : > { %3183 = vmatmul.mubr.msk.bf16.gmra.mrb[16].mxu0 %vm499_vm1, %v3990_v59  ;;  %v4322_v59 = vld [vmem:[#allocation2_spill] sm:$0xff] }
  0x82   : > { %3186 = vmatprep.mubr.msk.bf16.mxu0 %vm499_vm1, %v1777_v40  ;;  %v4324_v40 = vld [vmem:[#allocation4_spill] sm:$0xff] }
  0x87   : > { %3067 = vmatmul.mubr.msk.bf16.gmra.mrb[20].mxu1 %vm499_vm1, %v3775_v61  ;;  %v4323_v61 = vld [vmem:[#allocation3_spill] sm:$0xff] }
  0x88   : > { %3070 = vmatprep.mubr.msk.bf16.mxu1 %vm499_vm1, %v3789_v25  ;;  %v2110_v25 = vrot.slane %v3849_v39, 3 }
  0x89   : > { %3187 = vmatmul.mubr.msk.bf16.gmra.mrb[20].mxu0 %vm499_vm1, %v1781_v63 }
  0x8a   : > { %3190 = vmatprep.mubr.msk.bf16.mxu0 %vm499_vm1, %v1785_v16  ;;  %v2111_v28 = vsel %vm2080_vm3, %v2108_v2, %v2110_v25  ;;  %v4177_v16 = vld [vmem:[%s4260_s2] ss:$0 sm:$0xff] }
  0x8f   : > { %3071 = vmatmul.mubr.msk.bf16.gmra.mrb[24].mxu1 %vm499_vm1, %v3803_v56  ;;  %v2109_v56 = vsel %vm2080_vm3, %v2106_v15, %v2108_v2 }
  0x90   : > { %3074 = vmatprep.mubr.msk.bf16.mxu1 %vm499_vm1, %v3820_v26  ;;  %v4326_v26 = vld [vmem:[#allocation6_spill] sm:$0xff] }
  0x91   : > { %3191 = vmatmul.mubr.msk.bf16.gmra.mrb[24].mxu0 %vm499_vm1, %v1789_v46 }
  0x92   : > { %3194 = vmatprep.mubr.msk.bf16.mxu0 %vm499_vm1, %v1793_v57 }
  0x97   : > { %3075 = vmatmul.mubr.msk.bf16.gmra.mrb[28].mxu1 %vm499_vm1, %v3849_v39  ;;  %v2113_v39 = vsel %vm2080_vm3, %v2110_v25, %v2112_v4 }
  0x98   : > { %3086 = vmatprep.mubr.msk.bf16.mxu1 %vm499_vm1, %v3589_v12  ;;  %v2087_v12 = vsel %vm2080_vm3, %v2084_v9, %v2086_v55 }
  0x99   : > { %3195 = vmatmul.mubr.msk.bf16.gmra.mrb[28].mxu0 %vm499_vm1, %v1802_v6 }
  0x9a   : > { %3206 = vmatprep.mubr.msk.bf16.mxu0 %vm499_vm1, %v2083_v8 }
  0x9f   : > { %3087 = vmatmul.mubr.msk.bf16.vlgmr.msra.gmra.mrb[0].mxu1 %vm499_vm1, %v3596_v17  ;;  %v2089_v17 = vsel %vm2080_vm3, %v2086_v55, %v2088_v37 }
  0xa0   : > { %3090 = vmatprep.mubr.msk.bf16.mxu1 %vm499_vm1, %v3614_v33  ;;  %v2091_v33 = vsel %vm2080_vm3, %v2088_v37, %v2090_v20 }
  0xa1   : > { %3207 = vmatmul.mubr.msk.bf16.vlgmr.msra.gmra.mrb[0].mxu0 %vm499_vm1, %v2085_v11 }
  0xa2   : > { %3210 = vmatprep.mubr.msk.bf16.mxu0 %vm499_vm1, %v2087_v12 }
  0xa7   : > { %3091 = vmatmul.mubr.msk.bf16.gmra.mrb[4].mxu1 %vm499_vm1, %v3633_v43  ;;  %v2093_v43 = vsel %vm2080_vm3, %v2090_v20, %v2092_v41 }
  0xa8   : > { %3094 = vmatprep.mubr.msk.bf16.mxu1 %vm499_vm1, %v3646_v52  ;;  %v2095_v52 = vsel %vm2080_vm3, %v2092_v41, %v2094_v45 }
  0xa9   : > { %3211 = vmatmul.mubr.msk.bf16.gmra.mrb[4].mxu0 %vm499_vm1, %v2089_v17 }
  0xaa   : > { %3214 = vmatprep.mubr.msk.bf16.mxu0 %vm499_vm1, %v2091_v33 }
  0xaf   : > { %3095 = vmatmul.mubr.msk.bf16.gmra.mrb[8].mxu1 %vm499_vm1, %v3664_v0  ;;  %v2097_v0 = vsel %vm2080_vm3, %v2094_v45, %v2096_v60 }
  0xb0   : > { %3098 = vmatprep.mubr.msk.bf16.mxu1 %vm499_vm1, %v3688_v24  ;;  %v2099_v24 = vsel %vm2080_vm3, %v2096_v60, %v2098_v13 }
  0xb1   : > { %3215 = vmatmul.mubr.msk.bf16.gmra.mrb[8].mxu0 %vm499_vm1, %v2093_v43 }
  0xb2   : > { %3218 = vmatprep.mubr.msk.bf16.mxu0 %vm499_vm1, %v2095_v52 }
  0xb7   : > { %3099 = vmatmul.mubr.msk.bf16.gmra.mrb[12].mxu1 %vm499_vm1, %v3711_v44  ;;  %v2101_v44 = vsel %vm2080_vm3, %v2098_v13, %v2100_v35 }
  0xb8   : > { %3102 = vmatprep.mubr.msk.bf16.mxu1 %vm499_vm1, %v3721_v54  ;;  %v2103_v54 = vsel %vm2080_vm3, %v2100_v35, %v2102_v49 }
  0xb9   : > { %3219 = vmatmul.mubr.msk.bf16.gmra.mrb[12].mxu0 %vm499_vm1, %v2097_v0 }
  0xba   : > { %3222 = vmatprep.mubr.msk.bf16.mxu0 %vm499_vm1, %v2099_v24 }
  0xbf   : > { %3103 = vmatmul.mubr.msk.bf16.gmra.mrb[16].mxu1 %vm499_vm1, %v3741_v14  ;;  %v2105_v14 = vsel %vm2080_vm3, %v2102_v49, %v2104_v62 }
  0xc0   : > { %3106 = vmatprep.mubr.msk.bf16.mxu1 %vm499_vm1, %v3759_v31  ;;  %v2107_v31 = vsel %vm2080_vm3, %v2104_v62, %v2106_v15 }
  0xc1   : > { %3223 = vmatmul.mubr.msk.bf16.gmra.mrb[16].mxu0 %vm499_vm1, %v2101_v44 }
  0xc2   : > { %3226 = vmatprep.mubr.msk.bf16.mxu0 %vm499_vm1, %v2103_v54 }
  0xc7   : > { %3107 = vmatmul.mubr.msk.bf16.gmra.mrb[20].mxu1 %vm499_vm1, %v4322_v59 }
  0xc8   : > { %3110 = vmatprep.mubr.msk.bf16.mxu1 %vm499_vm1, %v4323_v61 }
  0xc9   : > { %3227 = vmatmul.mubr.msk.bf16.gmra.mrb[20].mxu0 %vm499_vm1, %v2105_v14 }
  0xca   : > { %3230 = vmatprep.mubr.msk.bf16.mxu0 %vm499_vm1, %v2107_v31 }
  0xcf   : > { %3111 = vmatmul.mubr.msk.bf16.gmra.mrb[24].mxu1 %vm499_vm1, %v4324_v40 }
  0xd0   : > { %3114 = vmatprep.mubr.msk.bf16.mxu1 %vm499_vm1, %v4325_v51 }
  0xd1   : > { %3231 = vmatmul.mubr.msk.bf16.gmra.mrb[24].mxu0 %vm499_vm1, %v2109_v56 }
  0xd2   : > { %3234 = vmatprep.mubr.msk.bf16.mxu0 %vm499_vm1, %v2111_v28 }
  0xd7   : > { %3115 = vmatmul.mubr.msk.bf16.gmra.mrb[28].mxu1 %vm499_vm1, %v4326_v26 }
  0xd9   : > { %3235 = vmatmul.mubr.msk.bf16.gmra.mrb[28].mxu0 %vm499_vm1, %v2113_v39 }
 0x172   : > { %v3088_v29 = vpop.f32.mrb[0].mxu1 }
 0x173   : > { %v1155_v50 = vpop.f32.mrb[1].mxu1 }
 0x174   : > { %v3089_v63 = vpop.f32.mrb[2].mxu1  ;;  %v3208_v19 = vpop.f32.mrb[0].mxu0 }
 0x175   : > { %v1158_v3 = vpop.f32.mrb[3].mxu1  ;;  %v3238_v10 = vadd.f32 %v3208_v19, %v3088_v29  ;;  %v2220_v46 = vpop.f32.mrb[1].mxu0 }
 0x176   : > { %v3239_v27 = vadd.f32 %v2220_v46, %v1155_v50  ;;  %v3209_v47 = vpop.f32.mrb[2].mxu0 }
 0x177   : > { %v2388_v42 = vadd.f32 %v3238_v10, %v4177_v16  ;;  %v3240_v57 = vadd.f32 %v3209_v47, %v3089_v63  ;;  %v2223_v32 = vpop.f32.mrb[3].mxu0 }
 0x178   : > { %v2386_v22 = vadd.f32 %v3239_v27, %v4177_v16  ;;  %v3241_v23 = vadd.f32 %v2223_v32, %v1158_v3 }
 0x179   : > { %vm2420_vm4 = vcmp.ge.f32.partialorder %v2388_v42, 0.0  ;;  %v2452_v48 = vmul.f32 0.01, %v2388_v42  ;;  %v2389_v1 = vadd.f32 %v3240_v57, %v4177_v16 }
 0x17a   : > { %v3092_v6 = vpop.f32.mrb[4].mxu1  ;;  %vm2418_vm5 = vcmp.ge.f32.partialorder %v2386_v22, 0.0  ;;  %v2450_v30 = vmul.f32 0.01, %v2386_v22  ;;  %v2387_v18 = vadd.f32 %v3241_v23, %v4177_v16 }
 0x17b   : > { %v1171_v34 = vpop.f32.mrb[5].mxu1  ;;  %v2484_v5 = vsel %vm2420_vm4, %v2388_v42, %v2452_v48  ;;  %vm2421_vm6 = vcmp.ge.f32.partialorder %v2389_v1, 0.0  ;;  %v2453_v36 = vmul.f32 0.01, %v2389_v1 }
 0x17c   : > { %v3093_v53 = vpop.f32.mrb[6].mxu1  ;;  %2516 = vst [vmem:[%s4185_s27 + $0x10] sm:$0xff] %v2484_v5  ;;  %v2482_v21 = vsel %vm2418_vm5, %v2386_v22, %v2450_v30  ;;  %vm2419_vm7 = vcmp.ge.f32.partialorder %v2387_v18, 0.0  ;;  %v2451_v7 = vmul.f32 0.01, %v2387_v18  ;;  %v3212_v58 = vpop.f32.mrb[4].mxu0 }
 0x17d   : > { %v1174_v38 = vpop.f32.mrb[7].mxu1  ;;  %2514 = vst [vmem:[%s4185_s27] sm:$0xff] %v2482_v21  ;;  %v2485_v8 = vsel %vm2421_vm6, %v2389_v1, %v2453_v36  ;;  %v3242_v9 = vadd.f32 %v3212_v58, %v3092_v6  ;;  %v2236_v55 = vpop.f32.mrb[5].mxu0 }
 0x17e   : > { %2517 = vst [vmem:[%s4185_s27 + $0x18] sm:$0xff] %v2485_v8  ;;  %v2483_v11 = vsel %vm2419_vm7, %v2387_v18, %v2451_v7  ;;  %v3243_v12 = vadd.f32 %v2236_v55, %v1171_v34  ;;  %v3213_v37 = vpop.f32.mrb[6].mxu0 }
 0x17f   : > { %2515 = vst [vmem:[%s4185_s27 + $0x8] sm:$0xff] %v2483_v11  ;;  %v2392_v20 = vadd.f32 %v3242_v9, %v4177_v16  ;;  %v3244_v17 = vadd.f32 %v3213_v37, %v3093_v53  ;;  %v2239_v33 = vpop.f32.mrb[7].mxu0 }
 0x180   : > { %v2390_v41 = vadd.f32 %v3243_v12, %v4177_v16  ;;  %v3245_v45 = vadd.f32 %v2239_v33, %v1174_v38 }
 0x181   : > { %vm2424_vm8 = vcmp.ge.f32.partialorder %v2392_v20, 0.0  ;;  %v2456_v52 = vmul.f32 0.01, %v2392_v20  ;;  %v2393_v60 = vadd.f32 %v3244_v17, %v4177_v16 }
 0x182   : > { %v3096_v43 = vpop.f32.mrb[8].mxu1  ;;  %vm2422_vm9 = vcmp.ge.f32.partialorder %v2390_v41, 0.0  ;;  %v2454_v0 = vmul.f32 0.01, %v2390_v41  ;;  %v2391_v24 = vadd.f32 %v3245_v45, %v4177_v16 }
 0x183   : > { %v1187_v13 = vpop.f32.mrb[9].mxu1  ;;  %v2488_v49 = vsel %vm2424_vm8, %v2392_v20, %v2456_v52  ;;  %vm2425_vm10 = vcmp.ge.f32.partialorder %v2393_v60, 0.0  ;;  %v2457_v44 = vmul.f32 0.01, %v2393_v60 }
 0x184   : > { %v3097_v35 = vpop.f32.mrb[10].mxu1  ;;  %2520 = vst [vmem:[%s4185_s27 + $0x30] sm:$0xff] %v2488_v49  ;;  %v2486_v62 = vsel %vm2422_vm9, %v2390_v41, %v2454_v0  ;;  %vm2423_vm11 = vcmp.ge.f32.partialorder %v2391_v24, 0.0  ;;  %v2455_v15 = vmul.f32 0.01, %v2391_v24  ;;  %v3216_v59 = vpop.f32.mrb[8].mxu0 }
 0x185   : > { %v1190_v54 = vpop.f32.mrb[11].mxu1  ;;  %2518 = vst [vmem:[%s4185_s27 + $0x20] sm:$0xff] %v2486_v62  ;;  %v2489_v14 = vsel %vm2425_vm10, %v2393_v60, %v2457_v44  ;;  %v3246_v61 = vadd.f32 %v3216_v59, %v3096_v43  ;;  %v2252_v31 = vpop.f32.mrb[9].mxu0 }
 0x186   : > { %2521 = vst [vmem:[%s4185_s27 + $0x38] sm:$0xff] %v2489_v14  ;;  %v2487_v2 = vsel %vm2423_vm11, %v2391_v24, %v2455_v15  ;;  %v3247_v25 = vadd.f32 %v2252_v31, %v1187_v13  ;;  %v3217_v40 = vpop.f32.mrb[10].mxu0 }
 0x187   : > { %2519 = vst [vmem:[%s4185_s27 + $0x28] sm:$0xff] %v2487_v2  ;;  %v2396_v56 = vadd.f32 %v3246_v61, %v4177_v16  ;;  %v3248_v51 = vadd.f32 %v3217_v40, %v3097_v35  ;;  %v2255_v28 = vpop.f32.mrb[11].mxu0 }
 0x188   : > { %v2394_v4 = vadd.f32 %v3247_v25, %v4177_v16  ;;  %v3249_v26 = vadd.f32 %v2255_v28, %v1190_v54 }
 0x189   : > { %vm2428_vm12 = vcmp.ge.f32.partialorder %v2396_v56, 0.0  ;;  %v2460_v29 = vmul.f32 0.01, %v2396_v56  ;;  %v2397_v50 = vadd.f32 %v3248_v51, %v4177_v16 }
 0x18a   : > { %v3100_v39 = vpop.f32.mrb[12].mxu1  ;;  %vm2426_vm13 = vcmp.ge.f32.partialorder %v2394_v4, 0.0  ;;  %v2458_v3 = vmul.f32 0.01, %v2394_v4  ;;  %v2395_v19 = vadd.f32 %v3249_v26, %v4177_v16 }
 0x18b   : > { %v1203_v63 = vpop.f32.mrb[13].mxu1  ;;  %v2492_v46 = vsel %vm2428_vm12, %v2396_v56, %v2460_v29  ;;  %vm2429_vm14 = vcmp.ge.f32.partialorder %v2397_v50, 0.0  ;;  %v2461_v27 = vmul.f32 0.01, %v2397_v50 }
 0x18c   : > { %v3101_v10 = vpop.f32.mrb[14].mxu1  ;;  %2524 = vst [vmem:[%s4185_s27 + $0x50] sm:$0xff] %v2492_v46  ;;  %v2490_v42 = vsel %vm2426_vm13, %v2394_v4, %v2458_v3  ;;  %vm2427_vm15 = vcmp.ge.f32.partialorder %v2395_v19, 0.0  ;;  %v2459_v57 = vmul.f32 0.01, %v2395_v19  ;;  %v3220_v32 = vpop.f32.mrb[12].mxu0 }
 0x18d   : > { %v1206_v47 = vpop.f32.mrb[15].mxu1  ;;  %2522 = vst [vmem:[%s4185_s27 + $0x40] sm:$0xff] %v2490_v42  ;;  %v2493_v22 = vsel %vm2429_vm14, %v2397_v50, %v2461_v27  ;;  %v3250_v23 = vadd.f32 %v3220_v32, %v3100_v39  ;;  %v2268_v6 = vpop.f32.mrb[13].mxu0 }
 0x18e   : > { %2525 = vst [vmem:[%s4185_s27 + $0x58] sm:$0xff] %v2493_v22  ;;  %v2491_v48 = vsel %vm2427_vm15, %v2395_v19, %v2459_v57  ;;  %v3251_v1 = vadd.f32 %v2268_v6, %v1203_v63  ;;  %v3221_v34 = vpop.f32.mrb[14].mxu0 }
 0x18f   : > { %2523 = vst [vmem:[%s4185_s27 + $0x48] sm:$0xff] %v2491_v48  ;;  %v2400_v30 = vadd.f32 %v3250_v23, %v4177_v16  ;;  %v3252_v18 = vadd.f32 %v3221_v34, %v3101_v10  ;;  %v2271_v53 = vpop.f32.mrb[15].mxu0 }
 0x190   : > { %v2398_v5 = vadd.f32 %v3251_v1, %v4177_v16  ;;  %v3253_v36 = vadd.f32 %v2271_v53, %v1206_v47 }
 0x191   : > { %vm2432_vm0 = vcmp.ge.f32.partialorder %v2400_v30, 0.0  ;;  %v2464_v21 = vmul.f32 0.01, %v2400_v30  ;;  %v2401_v7 = vadd.f32 %v3252_v18, %v4177_v16 }
 0x192   : > { %v3104_v38 = vpop.f32.mrb[16].mxu1  ;;  %vm2430_vm1 = vcmp.ge.f32.partialorder %v2398_v5, 0.0  ;;  %v2462_v8 = vmul.f32 0.01, %v2398_v5  ;;  %v2399_v9 = vadd.f32 %v3253_v36, %v4177_v16 }
 0x193   : > { %v1219_v58 = vpop.f32.mrb[17].mxu1  ;;  %v2496_v11 = vsel %vm2432_vm0, %v2400_v30, %v2464_v21  ;;  %vm2433_vm2 = vcmp.ge.f32.partialorder %v2401_v7, 0.0  ;;  %v2465_v12 = vmul.f32 0.01, %v2401_v7 }
 0x194   : > { %v3105_v55 = vpop.f32.mrb[18].mxu1  ;;  %2528 = vst [vmem:[%s4185_s27 + $0x70] sm:$0xff] %v2496_v11  ;;  %v2494_v20 = vsel %vm2430_vm1, %v2398_v5, %v2462_v8  ;;  %vm2431_vm3 = vcmp.ge.f32.partialorder %v2399_v9, 0.0  ;;  %v2463_v17 = vmul.f32 0.01, %v2399_v9  ;;  %v3224_v33 = vpop.f32.mrb[16].mxu0 }
 0x195   : > { %v1222_v37 = vpop.f32.mrb[19].mxu1  ;;  %2526 = vst [vmem:[%s4185_s27 + $0x60] sm:$0xff] %v2494_v20  ;;  %v2497_v41 = vsel %vm2433_vm2, %v2401_v7, %v2465_v12  ;;  %v3254_v45 = vadd.f32 %v3224_v33, %v3104_v38  ;;  %v2284_v43 = vpop.f32.mrb[17].mxu0 }
 0x196   : > { %2529 = vst [vmem:[%s4185_s27 + $0x78] sm:$0xff] %v2497_v41  ;;  %v2495_v52 = vsel %vm2431_vm3, %v2399_v9, %v2463_v17  ;;  %v3255_v60 = vadd.f32 %v2284_v43, %v1219_v58  ;;  %v3225_v13 = vpop.f32.mrb[18].mxu0 }
 0x197   : > { %2527 = vst [vmem:[%s4185_s27 + $0x68] sm:$0xff] %v2495_v52  ;;  %v2404_v0 = vadd.f32 %v3254_v45, %v4177_v16  ;;  %v3256_v24 = vadd.f32 %v3225_v13, %v3105_v55  ;;  %v2287_v35 = vpop.f32.mrb[19].mxu0 }
 0x198   : > { %v2402_v49 = vadd.f32 %v3255_v60, %v4177_v16  ;;  %v3257_v44 = vadd.f32 %v2287_v35, %v1222_v37 }
 0x199   : > { %vm2436_vm4 = vcmp.ge.f32.partialorder %v2404_v0, 0.0  ;;  %v2468_v62 = vmul.f32 0.01, %v2404_v0  ;;  %v2405_v15 = vadd.f32 %v3256_v24, %v4177_v16 }
 0x19a   : > { %v3108_v54 = vpop.f32.mrb[20].mxu1  ;;  %vm2434_vm5 = vcmp.ge.f32.partialorder %v2402_v49, 0.0  ;;  %v2466_v14 = vmul.f32 0.01, %v2402_v49  ;;  %v2403_v61 = vadd.f32 %v3257_v44, %v4177_v16 }
 0x19b   : > { %v1235_v59 = vpop.f32.mrb[21].mxu1  ;;  %v2500_v2 = vsel %vm2436_vm4, %v2404_v0, %v2468_v62  ;;  %vm2437_vm6 = vcmp.ge.f32.partialorder %v2405_v15, 0.0  ;;  %v2469_v25 = vmul.f32 0.01, %v2405_v15 }
 0x19c   : > { %v3109_v31 = vpop.f32.mrb[22].mxu1  ;;  %2532 = vst [vmem:[%s4185_s27 + $0x90] sm:$0xff] %v2500_v2  ;;  %v2498_v56 = vsel %vm2434_vm5, %v2402_v49, %v2466_v14  ;;  %vm2435_vm7 = vcmp.ge.f32.partialorder %v2403_v61, 0.0  ;;  %v2467_v51 = vmul.f32 0.01, %v2403_v61  ;;  %v3228_v28 = vpop.f32.mrb[20].mxu0 }
 0x19d   : > { %v1238_v40 = vpop.f32.mrb[23].mxu1  ;;  %2530 = vst [vmem:[%s4185_s27 + $0x80] sm:$0xff] %v2498_v56  ;;  %v2501_v4 = vsel %vm2437_vm6, %v2405_v15, %v2469_v25  ;;  %v3258_v26 = vadd.f32 %v3228_v28, %v3108_v54  ;;  %v2300_v39 = vpop.f32.mrb[21].mxu0 }
 0x19e   : > { %2533 = vst [vmem:[%s4185_s27 + $0x98] sm:$0xff] %v2501_v4  ;;  %v2499_v29 = vsel %vm2435_vm7, %v2403_v61, %v2467_v51  ;;  %v3259_v50 = vadd.f32 %v2300_v39, %v1235_v59  ;;  %v3229_v63 = vpop.f32.mrb[22].mxu0 }
 0x19f   : > { %2531 = vst [vmem:[%s4185_s27 + $0x88] sm:$0xff] %v2499_v29  ;;  %v2408_v3 = vadd.f32 %v3258_v26, %v4177_v16  ;;  %v3260_v19 = vadd.f32 %v3229_v63, %v3109_v31  ;;  %v2303_v10 = vpop.f32.mrb[23].mxu0 }
 0x1a0   : > { %v2406_v46 = vadd.f32 %v3259_v50, %v4177_v16  ;;  %v3261_v27 = vadd.f32 %v2303_v10, %v1238_v40 }
 0x1a1   : > { %vm2440_vm8 = vcmp.ge.f32.partialorder %v2408_v3, 0.0  ;;  %v2472_v42 = vmul.f32 0.01, %v2408_v3  ;;  %v2409_v57 = vadd.f32 %v3260_v19, %v4177_v16 }
 0x1a2   : > { %v3112_v47 = vpop.f32.mrb[24].mxu1  ;;  %vm2438_vm9 = vcmp.ge.f32.partialorder %v2406_v46, 0.0  ;;  %v2470_v22 = vmul.f32 0.01, %v2406_v46  ;;  %v2407_v23 = vadd.f32 %v3261_v27, %v4177_v16 }
 0x1a3   : > { %v1251_v32 = vpop.f32.mrb[25].mxu1  ;;  %v2504_v48 = vsel %vm2440_vm8, %v2408_v3, %v2472_v42  ;;  %vm2441_vm10 = vcmp.ge.f32.partialorder %v2409_v57, 0.0  ;;  %v2473_v1 = vmul.f32 0.01, %v2409_v57 }
 0x1a4   : > { %v3113_v6 = vpop.f32.mrb[26].mxu1  ;;  %2536 = vst [vmem:[%s4185_s27 + $0xb0] sm:$0xff] %v2504_v48  ;;  %v2502_v30 = vsel %vm2438_vm9, %v2406_v46, %v2470_v22  ;;  %vm2439_vm11 = vcmp.ge.f32.partialorder %v2407_v23, 0.0  ;;  %v2471_v18 = vmul.f32 0.01, %v2407_v23  ;;  %v3232_v53 = vpop.f32.mrb[24].mxu0 }
 0x1a5   : > { %v1254_v34 = vpop.f32.mrb[27].mxu1  ;;  %2534 = vst [vmem:[%s4185_s27 + $0xa0] sm:$0xff] %v2502_v30  ;;  %v2505_v5 = vsel %vm2441_vm10, %v2409_v57, %v2473_v1  ;;  %v3262_v36 = vadd.f32 %v3232_v53, %v3112_v47  ;;  %v2316_v38 = vpop.f32.mrb[25].mxu0 }
 0x1a6   : > { %2537 = vst [vmem:[%s4185_s27 + $0xb8] sm:$0xff] %v2505_v5  ;;  %v2503_v21 = vsel %vm2439_vm11, %v2407_v23, %v2471_v18  ;;  %v3263_v7 = vadd.f32 %v2316_v38, %v1251_v32  ;;  %v3233_v58 = vpop.f32.mrb[26].mxu0 }
 0x1a7   : > { %2535 = vst [vmem:[%s4185_s27 + $0xa8] sm:$0xff] %v2503_v21  ;;  %v2412_v8 = vadd.f32 %v3262_v36, %v4177_v16  ;;  %v3264_v9 = vadd.f32 %v3233_v58, %v3113_v6  ;;  %v2319_v55 = vpop.f32.mrb[27].mxu0 }
 0x1a8   : > { %v2410_v11 = vadd.f32 %v3263_v7, %v4177_v16  ;;  %v3265_v12 = vadd.f32 %v2319_v55, %v1254_v34 }
 0x1a9   : > { %vm2444_vm12 = vcmp.ge.f32.partialorder %v2412_v8, 0.0  ;;  %v2476_v20 = vmul.f32 0.01, %v2412_v8  ;;  %v2413_v17 = vadd.f32 %v3264_v9, %v4177_v16 }
 0x1aa   : > { %v3116_v37 = vpop.f32.mrb[28].mxu1  ;;  %vm2442_vm13 = vcmp.ge.f32.partialorder %v2410_v11, 0.0  ;;  %v2474_v41 = vmul.f32 0.01, %v2410_v11  ;;  %v2411_v45 = vadd.f32 %v3265_v12, %v4177_v16 }
 0x1ab   : > { %v1267_v33 = vpop.f32.mrb[29].mxu1  ;;  %v2508_v52 = vsel %vm2444_vm12, %v2412_v8, %v2476_v20  ;;  %vm2445_vm14 = vcmp.ge.f32.partialorder %v2413_v17, 0.0  ;;  %v2477_v60 = vmul.f32 0.01, %v2413_v17 }
 0x1ac   : > { %v3117_v43 = vpop.f32.mrb[30].mxu1  ;;  %2540 = vst [vmem:[%s4185_s27 + $0xd0] sm:$0xff] %v2508_v52  ;;  %v2506_v0 = vsel %vm2442_vm13, %v2410_v11, %v2474_v41  ;;  %vm2443_vm15 = vcmp.ge.f32.partialorder %v2411_v45, 0.0  ;;  %v2475_v24 = vmul.f32 0.01, %v2411_v45  ;;  %v3236_v35 = vpop.f32.mrb[28].mxu0 }
 0x1ad   : > { %v1270_v13 = vpop.f32.mrb[31].mxu1  ;;  %2538 = vst [vmem:[%s4185_s27 + $0xc0] sm:$0xff] %v2506_v0  ;;  %v2509_v49 = vsel %vm2445_vm14, %v2413_v17, %v2477_v60  ;;  %v3266_v44 = vadd.f32 %v3236_v35, %v3116_v37  ;;  %v2332_v54 = vpop.f32.mrb[29].mxu0 }
 0x1ae   : > { %2541 = vst [vmem:[%s4185_s27 + $0xd8] sm:$0xff] %v2509_v49  ;;  %v2507_v62 = vsel %vm2443_vm15, %v2411_v45, %v2475_v24  ;;  %v3267_v15 = vadd.f32 %v2332_v54, %v1267_v33  ;;  %v3237_v59 = vpop.f32.mrb[30].mxu0 }
 0x1af   : > { %2539 = vst [vmem:[%s4185_s27 + $0xc8] sm:$0xff] %v2507_v62  ;;  %v2416_v14 = vadd.f32 %v3266_v44, %v4177_v16  ;;  %v3268_v61 = vadd.f32 %v3237_v59, %v3117_v43  ;;  %v2335_v31 = vpop.f32.mrb[31].mxu0 }
 0x1b0   : > { %v2414_v2 = vadd.f32 %v3267_v15, %v4177_v16  ;;  %v3269_v25 = vadd.f32 %v2335_v31, %v1270_v13 }
 0x1b1   : > { %vm2448_vm0 = vcmp.ge.f32.partialorder %v2416_v14, 0.0  ;;  %v2480_v40 = vmul.f32 0.01, %v2416_v14  ;;  %v2417_v56 = vadd.f32 %v3268_v61, %v4177_v16 }
 0x1b2   : > { %vm2446_vm1 = vcmp.ge.f32.partialorder %v2414_v2, 0.0  ;;  %v2478_v51 = vmul.f32 0.01, %v2414_v2  ;;  %v2415_v28 = vadd.f32 %v3269_v25, %v4177_v16 }
 0x1b3   : > { %v2512_v4 = vsel %vm2448_vm0, %v2416_v14, %v2480_v40  ;;  %vm2449_vm2 = vcmp.ge.f32.partialorder %v2417_v56, 0.0  ;;  %v2481_v26 = vmul.f32 0.01, %v2417_v56 }
 0x1b4   : > { %2544 = vst [vmem:[%s4185_s27 + $0xf0] sm:$0xff] %v2512_v4  ;;  %v2510_v39 = vsel %vm2446_vm1, %v2414_v2, %v2478_v51  ;;  %vm2447_vm3 = vcmp.ge.f32.partialorder %v2415_v28, 0.0  ;;  %v2479_v29 = vmul.f32 0.01, %v2415_v28 }
 0x1b5   : > { %2542 = vst [vmem:[%s4185_s27 + $0xe0] sm:$0xff] %v2510_v39  ;;  %v2513_v50 = vsel %vm2449_vm2, %v2417_v56, %v2481_v26 }
 0x1b6   : > { %2545 = vst [vmem:[%s4185_s27 + $0xf8] sm:$0xff] %v2513_v50  ;;  %v2511_v63 = vsel %vm2447_vm3, %v2415_v28, %v2479_v29 }
 0x1b7   : > { %2543 = vst [vmem:[%s4185_s27 + $0xe8] sm:$0xff] %v2511_v63 }
 0x1b8 PF: > { %s13_s14 = sadd.s32 1, %s3506_s14   ;;  %s4327_s12 = smov %s3502_s13 }
 0x1b9   : > { %p10_p5 = scmp.ge.s32.totalorder %s13_s14, 4   ;;  %s4328_s13 = smov %s4330_s15 }
 0x1bb   :  { %12 = sbr.rel (!%p10_p5) target bundleno = 2 (0x2), region = 68 }

</bundles_post_ra>
